<compile_context>
chip_gen: v6e
topology: v6e:2x2x1
jax: 0.10.0
libtpu: 0.0.40
codegen_flags: <defaults>
</compile_context>

<pallas_src>
import math

import jax
import jax.numpy as jnp
from jax import lax
from jax.experimental import pallas as pl
from jax.experimental.pallas import tpu as pltpu


# ----------------------------------------------------------------------------
# Fused encoder kernel (all transformer layers + mean pooling)
# ----------------------------------------------------------------------------

def make_fused_encoder_kernel(batch_block: int, seq_len: int, embed_dim: int,
                              num_heads: int):
    """Pre-LN TransformerEncoder (norm_first=True, relu FFN) + mean pool."""
    BT, S, E, H = batch_block, seq_len, embed_dim, num_heads
    Dh = E // H
    N = BT * S
    scale = 1.0 / math.sqrt(Dh)
    eps = 1e-5

    def _layernorm(x2, w_ref, b_ref):
        mu = jnp.mean(x2, axis=-1, keepdims=True)
        var = jnp.mean(jnp.square(x2 - mu), axis=-1, keepdims=True)
        return (x2 - mu) * lax.rsqrt(var + eps) * w_ref[...] + b_ref[...]

    def kernel(x_ref,
               ln1w_ref, ln1b_ref,
               wq_ref, wk_ref, wv_ref,
               bq_ref, bk_ref, bv_ref,
               wo_ref, bo_ref,
               ln2w_ref, ln2b_ref,
               w1_ref, b1_ref, w2_ref, b2_ref,
               out_ref,
               x_acc):
        layer = pl.program_id(1)

        # Load the input activation once per batch block; keep it resident.
        @pl.when(layer == 0)
        def _():
            x_acc[...] = x_ref[...].astype(jnp.float32)

        x = x_acc[...]                      # (BT, S, E) f32
        x2 = x.reshape(N, E)                # rows on sublanes, E on lanes

        # ---- self-attention block:  x = x + out_proj(MHA(LN1(x))) ----
        xn = _layernorm(x2, ln1w_ref, ln1b_ref)          # (N, E) f32
        xn_b = xn.astype(jnp.bfloat16)                   # MXU operands in bf16

        attn = jnp.zeros((N, E), jnp.float32)
        for h in range(H):                               # static unroll; weights
            wq_h = wq_ref[h]                             # on a leading axis -> no
            wk_h = wk_ref[h]                             # lane-axis slicing.
            wv_h = wv_ref[h]
            qh = jnp.dot(xn_b, wq_h, preferred_element_type=jnp.float32) + bq_ref[h]
            kh = jnp.dot(xn_b, wk_h, preferred_element_type=jnp.float32) + bk_ref[h]
            vh = jnp.dot(xn_b, wv_h, preferred_element_type=jnp.float32) + bv_ref[h]

            q3 = (qh * scale).reshape(BT, S, Dh).astype(jnp.bfloat16)
            k3 = kh.reshape(BT, S, Dh).astype(jnp.bfloat16)
            v3 = vh.reshape(BT, S, Dh).astype(jnp.bfloat16)

            # Batched over the rows in this block (single batch dim).
            s = jnp.einsum('bqd,bkd->bqk', q3, k3,
                           preferred_element_type=jnp.float32)     # (BT, S, S) f32
            s = s - jnp.max(s, axis=-1, keepdims=True)
            p = jnp.exp(s)
            p = p * pl.reciprocal(jnp.sum(p, axis=-1, keepdims=True), approx=True)

            oh = jnp.einsum('bqk,bkd->bqd', p.astype(jnp.bfloat16), v3,
                            preferred_element_type=jnp.float32)    # (BT, S, Dh)
            # out_proj(concat_h) == sum_h oh @ Wo[h]  -> no lane-axis concat.
            attn = attn + jnp.dot(oh.reshape(N, Dh).astype(jnp.bfloat16), wo_ref[h],
                                  preferred_element_type=jnp.float32)

        x2 = x2 + attn + bo_ref[...]

        # ---- feed-forward block:  x = x + W2(relu(W1(LN2(x)))) ----
        xn2 = _layernorm(x2, ln2w_ref, ln2b_ref)
        hid = jnp.dot(xn2.astype(jnp.bfloat16), w1_ref[...],
                      preferred_element_type=jnp.float32) + b1_ref[...]   # (N, 4E)
        hid = jnp.maximum(hid, 0.0)
        ffn = jnp.dot(hid.astype(jnp.bfloat16), w2_ref[...],
                      preferred_element_type=jnp.float32) + b2_ref[...]   # (N, E)
        x2 = x2 + ffn

        x_new = x2.reshape(BT, S, E)
        x_acc[...] = x_new

        # Fused mean pooling over the sequence in the last layer's epilogue.
        @pl.when(layer == pl.num_programs(1) - 1)
        def _():
            out_ref[...] = jnp.mean(x_new, axis=1, keepdims=True).astype(out_ref.dtype)

    return kernel


# ----------------------------------------------------------------------------
# pallas_call wrapper
# ----------------------------------------------------------------------------

def _layer_spec(arr):
    """BlockSpec for a weight stacked with a leading layer axis: stream per layer."""
    rest = tuple(arr.shape[1:])
    zeros = (0,) * len(rest)
    return pl.BlockSpec((None,) + rest, lambda b, l, _z=zeros: (l,) + _z)


def _pick_batch_block(B, S, E):
    bb = B
    # keep the f32 activation block under ~4 MiB
    while bb > 1 and bb * S * E * 4 > (4 << 20):
        bb = (bb + 1) // 2
    # keep >= 2 batch blocks when possible so both v7x TensorCores get work
    if B >= 2 and (B // bb) < 2:
        bb = max(1, bb // 2)
    while B % bb != 0:
        bb -= 1
    return bb


def _vmem_limit_bytes(Bt, S, E, L):
    act = Bt * S * E * 4                          # f32 activation block
    wts = 12 * E * E * 2                          # bf16 matmul weights per layer
    interm = Bt * S * (5 * E + S) * 4 * 2         # rough in-kernel temporaries
    need = 4 * act + 3 * wts + interm + (2 << 20)
    return int(min(max(need, 16 << 20), 64 << 20))


def run_encoder(x, params, num_heads):
    """x: (B, S, E) f32 embeddings -> (B, E) pooled encoder output."""
    B, S, E = x.shape
    L = params["wq"].shape[0]
    Bt = _pick_batch_block(B, S, E)

    kernel = make_fused_encoder_kernel(Bt, S, E, num_heads)
    weight_names = ["ln1_w", "ln1_b", "wq", "wk", "wv", "bq", "bk", "bv",
                    "wo", "bo", "ln2_w", "ln2_b", "w1", "b1", "w2", "b2"]
    weights = [params[n] for n in weight_names]

    in_specs = [pl.BlockSpec((Bt, S, E), lambda b, l: (b, 0, 0))] + \
               [_layer_spec(w) for w in weights]

    out = pl.pallas_call(
        kernel,
        out_shape=jax.ShapeDtypeStruct((B, 1, E), jnp.float32),
        grid=(B // Bt, L),
        in_specs=in_specs,
        out_specs=pl.BlockSpec((Bt, 1, E), lambda b, l: (b, 0, 0)),
        scratch_shapes=[pltpu.VMEM((Bt, S, E), jnp.float32)],
        compiler_params=pltpu.CompilerParams(
            dimension_semantics=("parallel", "arbitrary"),
            vmem_limit_bytes=_vmem_limit_bytes(Bt, S, E, L)),
    )(x, *weights)
    return out[:, 0, :]


# ----------------------------------------------------------------------------
# Parameters + encoder forward (embedding gathers are plain-JAX glue)
# ----------------------------------------------------------------------------

def init_encoder_params(key, vocab_size, embed_dim, num_heads, num_layers,
                        max_seq_length):
    E, H, L = embed_dim, num_heads, num_layers
    Dh = E // H
    keys = jax.random.split(key, 8)

    def nrm(k, shape):
        return 0.02 * jax.random.normal(k, shape, jnp.float32)

    return {
        "tok_emb": nrm(keys[0], (vocab_size, E)),
        "pos_emb": nrm(keys[1], (max_seq_length + 1, E)),
        # per-head attention weight planes on a leading axis (bf16 for MXU/DMA)
        "wq": nrm(keys[2], (L, H, E, Dh)).astype(jnp.bfloat16),
        "wk": nrm(keys[3], (L, H, E, Dh)).astype(jnp.bfloat16),
        "wv": nrm(keys[4], (L, H, E, Dh)).astype(jnp.bfloat16),
        "bq": jnp.zeros((L, H, 1, Dh), jnp.float32),
        "bk": jnp.zeros((L, H, 1, Dh), jnp.float32),
        "bv": jnp.zeros((L, H, 1, Dh), jnp.float32),
        "wo": nrm(keys[5], (L, H, Dh, E)).astype(jnp.bfloat16),
        "bo": jnp.zeros((L, 1, E), jnp.float32),
        "ln1_w": jnp.ones((L, 1, E), jnp.float32),
        "ln1_b": jnp.zeros((L, 1, E), jnp.float32),
        "ln2_w": jnp.ones((L, 1, E), jnp.float32),
        "ln2_b": jnp.zeros((L, 1, E), jnp.float32),
        "w1": nrm(keys[6], (L, E, 4 * E)).astype(jnp.bfloat16),
        "b1": jnp.zeros((L, 1, 4 * E), jnp.float32),
        "w2": nrm(keys[7], (L, 4 * E, E)).astype(jnp.bfloat16),
        "b2": jnp.zeros((L, 1, E), jnp.float32),
    }


def encode(tokens, params, pad_token_id, num_heads):
    """Encoder.forward with padding_mask=None (mean pooling over sequence)."""
    # TODO(synk): padding_mask path (masked attention + masked mean) not exercised here.
    B, S = tokens.shape
    is_pad = tokens == pad_token_id
    safe_tokens = jnp.where(is_pad, 0, tokens)
    tok_emb = params["tok_emb"][safe_tokens]                  # (B, S, E) gather (glue)
    tok_emb = jnp.where(is_pad[..., None], 0.0, tok_emb)
    pos_emb = params["pos_emb"][:S][None, :, :]               # positions = arange(S)
    x = (tok_emb + pos_emb).astype(jnp.float32)
    return run_encoder(x, params, num_heads)


def contrastive_reward_forward(melody_tokens, chord_tokens,
                               melody_params, chord_params,
                               pad_token_id, num_heads):
    melody_emb = encode(melody_tokens, melody_params, pad_token_id, num_heads)
    chord_emb = encode(chord_tokens, chord_params, pad_token_id, num_heads)
    return melody_emb, chord_emb


def get_reward(melody_emb, chord_emb, eps=1e-8):
    # F.cosine_similarity(dim=-1) equivalent (glue).
    num = jnp.sum(melody_emb * chord_emb, axis=-1)
    na = jnp.maximum(jnp.linalg.norm(melody_emb, axis=-1), eps)
    nb = jnp.maximum(jnp.linalg.norm(chord_emb, axis=-1), eps)
    return num / (na * nb)


# ----------------------------------------------------------------------------
# Pure-JAX reference (f32) for a correctness check
# ----------------------------------------------------------------------------

def encode_ref(tokens, params, pad_token_id, num_heads):
    B, S = tokens.shape
    E = params["tok_emb"].shape[1]
    H = num_heads
    Dh = E // H
    f32 = lambda a: a.astype(jnp.float32)

    is_pad = tokens == pad_token_id
    safe = jnp.where(is_pad, 0, tokens)
    tok = params["tok_emb"][safe]
    tok = jnp.where(is_pad[..., None], 0.0, tok)
    x = (tok + params["pos_emb"][:S][None]).astype(jnp.float32)

    def ln(z, w, b):
        mu = z.mean(-1, keepdims=True)
        var = ((z - mu) ** 2).mean(-1, keepdims=True)
        return (z - mu) / jnp.sqrt(var + 1e-5) * w + b

    L = params["wq"].shape[0]
    for l in range(L):
        xn = ln(x, f32(params["ln1_w"][l]), f32(params["ln1_b"][l]))
        attn = jnp.zeros_like(x)
        for h in range(H):
            q = xn @ f32(params["wq"][l, h]) + f32(params["bq"][l, h])
            k = xn @ f32(params["wk"][l, h]) + f32(params["bk"][l, h])
            v = xn @ f32(params["wv"][l, h]) + f32(params["bv"][l, h])
            s = jnp.einsum('bqd,bkd->bqk', q, k) / math.sqrt(Dh)
            p = jax.nn.softmax(s, axis=-1)
            o = jnp.einsum('bqk,bkd->bqd', p, v)
            attn = attn + o @ f32(params["wo"][l, h])
        x = x + attn + f32(params["bo"][l])
        xn2 = ln(x, f32(params["ln2_w"][l]), f32(params["ln2_b"][l]))
        hid = jax.nn.relu(xn2 @ f32(params["w1"][l]) + f32(params["b1"][l]))
        x = x + hid @ f32(params["w2"][l]) + f32(params["b2"][l])
    return x.mean(axis=1)


# ----------------------------------------------------------------------------
# Main
# ----------------------------------------------------------------------------

if __name__ == "__main__":
    B, S = 2, 8
    EMBED_DIM, NUM_HEADS, NUM_LAYERS = 32, 4, 2
    MAX_SEQ_LEN, PAD_TOKEN_ID = 16, 0
    MELODY_VOCAB, CHORD_VOCAB = 50, 40

    key = jax.random.PRNGKey(0)
    k_mel_tok, k_ch_tok, k_mel_par, k_ch_par = jax.random.split(key, 4)

    melody_tokens = jax.random.randint(k_mel_tok, (B, S), 1, MELODY_VOCAB, dtype=jnp.int32)
    chord_tokens = jax.random.randint(k_ch_tok, (B, S), 1, CHORD_VOCAB, dtype=jnp.int32)

    melody_params = init_encoder_params(k_mel_par, MELODY_VOCAB, EMBED_DIM,
                                        NUM_HEADS, NUM_LAYERS, MAX_SEQ_LEN)
    chord_params = init_encoder_params(k_ch_par, CHORD_VOCAB, EMBED_DIM,
                                       NUM_HEADS, NUM_LAYERS, MAX_SEQ_LEN)

    melody_emb, chord_emb = contrastive_reward_forward(
        melody_tokens, chord_tokens, melody_params, chord_params,
        PAD_TOKEN_ID, NUM_HEADS)
    reward = get_reward(melody_emb, chord_emb)
    jax.block_until_ready((melody_emb, chord_emb, reward))

    # Correctness check vs plain-JAX f32 reference (bf16 matmuls -> loose tol).
    melody_ref = encode_ref(melody_tokens, melody_params, PAD_TOKEN_ID, NUM_HEADS)
    chord_ref = encode_ref(chord_tokens, chord_params, PAD_TOKEN_ID, NUM_HEADS)
    assert melody_emb.shape == (B, EMBED_DIM)
    assert chord_emb.shape == (B, EMBED_DIM)
    assert reward.shape == (B,)
    assert bool(jnp.allclose(melody_emb, melody_ref, atol=5e-2, rtol=5e-2))
    assert bool(jnp.allclose(chord_emb, chord_ref, atol=5e-2, rtol=5e-2))
    print("KERNEL_OK")
</pallas_src>

<mosaic_0001>
module attributes {stable_mosaic.version = 11 : i64} {
  func.func @kernel(%arg0: i32, %arg1: i32, %arg2: memref<1x8x32xf32, #tpu.memory_space<vmem>>, %arg3: memref<1x1x32xf32, #tpu.memory_space<vmem>>, %arg4: memref<1x1x32xf32, #tpu.memory_space<vmem>>, %arg5: memref<1x4x32x8xbf16, #tpu.memory_space<vmem>>, %arg6: memref<1x4x32x8xbf16, #tpu.memory_space<vmem>>, %arg7: memref<1x4x32x8xbf16, #tpu.memory_space<vmem>>, %arg8: memref<1x4x1x8xf32, #tpu.memory_space<vmem>>, %arg9: memref<1x4x1x8xf32, #tpu.memory_space<vmem>>, %arg10: memref<1x4x1x8xf32, #tpu.memory_space<vmem>>, %arg11: memref<1x4x8x32xbf16, #tpu.memory_space<vmem>>, %arg12: memref<1x1x32xf32, #tpu.memory_space<vmem>>, %arg13: memref<1x1x32xf32, #tpu.memory_space<vmem>>, %arg14: memref<1x1x32xf32, #tpu.memory_space<vmem>>, %arg15: memref<1x32x128xbf16, #tpu.memory_space<vmem>>, %arg16: memref<1x1x128xf32, #tpu.memory_space<vmem>>, %arg17: memref<1x128x32xbf16, #tpu.memory_space<vmem>>, %arg18: memref<1x1x32xf32, #tpu.memory_space<vmem>>, %arg19: memref<1x1x32xf32, #tpu.memory_space<vmem>>, %arg20: memref<1x8x32xf32, #tpu.memory_space<vmem>>) attributes {dimension_semantics = [#tpu.dimension_semantics<parallel>, #tpu.dimension_semantics<arbitrary>], iteration_bounds = array<i64: 2, 2>, scalar_prefetch = 0 : i64, scratch_operands = 1 : i64, tpu.core_type = #tpu.core_type<tc>, window_params = [{transform_indices = @transform_0, window_bounds = array<i64: 1, 8, 32>}, {transform_indices = @transform_1, window_bounds = array<i64: 1, 1, 32>}, {transform_indices = @transform_2, window_bounds = array<i64: 1, 1, 32>}, {transform_indices = @transform_3, window_bounds = array<i64: 1, 4, 32, 8>}, {transform_indices = @transform_4, window_bounds = array<i64: 1, 4, 32, 8>}, {transform_indices = @transform_5, window_bounds = array<i64: 1, 4, 32, 8>}, {transform_indices = @transform_6, window_bounds = array<i64: 1, 4, 1, 8>}, {transform_indices = @transform_7, window_bounds = array<i64: 1, 4, 1, 8>}, {transform_indices = @transform_8, window_bounds = array<i64: 1, 4, 1, 8>}, {transform_indices = @transform_9, window_bounds = array<i64: 1, 4, 8, 32>}, {transform_indices = @transform_10, window_bounds = array<i64: 1, 1, 32>}, {transform_indices = @transform_11, window_bounds = array<i64: 1, 1, 32>}, {transform_indices = @transform_12, window_bounds = array<i64: 1, 1, 32>}, {transform_indices = @transform_13, window_bounds = array<i64: 1, 32, 128>}, {transform_indices = @transform_14, window_bounds = array<i64: 1, 1, 128>}, {transform_indices = @transform_15, window_bounds = array<i64: 1, 128, 32>}, {transform_indices = @transform_16, window_bounds = array<i64: 1, 1, 32>}, {transform_indices = @transform_17, window_bounds = array<i64: 1, 1, 32>}]} {
    %c0_i32 = arith.constant 0 : i32
    %0 = arith.cmpi eq, %arg1, %c0_i32 : i32
    %1 = arith.extui %0 : i1 to i32
    %c0_i32_0 = arith.constant 0 : i32
    %2 = arith.cmpi ne, %1, %c0_i32_0 : i32
    scf.if %2 {
      %c0_192 = arith.constant 0 : index
      %c0_193 = arith.constant 0 : index
      %c0_194 = arith.constant 0 : index
      %280 = vector.load %arg2[%c0_192, %c0_193, %c0_194] : memref<1x8x32xf32, #tpu.memory_space<vmem>>, vector<1x8x32xf32>
      %c0_195 = arith.constant 0 : index
      %c0_196 = arith.constant 0 : index
      %c0_197 = arith.constant 0 : index
      %281 = vector.load %arg20[%c0_195, %c0_196, %c0_197] : memref<1x8x32xf32, #tpu.memory_space<vmem>>, vector<1x8x32xf32>
      tpu.vector_store %arg20[%c0_195, %c0_196, %c0_197], %280 {strides = array<i32>} : memref<1x8x32xf32, #tpu.memory_space<vmem>>, vector<1x8x32xf32>,
    } else {
    }
    %c0 = arith.constant 0 : index
    %c0_1 = arith.constant 0 : index
    %c0_2 = arith.constant 0 : index
    %3 = vector.load %arg20[%c0, %c0_1, %c0_2] : memref<1x8x32xf32, #tpu.memory_space<vmem>>, vector<1x8x32xf32>
    %4 = vector.shape_cast %3 : vector<1x8x32xf32> to vector<8x32xf32>
    %cst = arith.constant dense<0.000000e+00> : vector<8xf32>
    %5 = vector.multi_reduction <add>, %4, %cst [1] : vector<8x32xf32> to vector<8xf32>
    %6 = vector.shape_cast %5 : vector<8xf32> to vector<8x1xf32>
    %cst_3 = arith.constant 3.200000e+01 : f32
    %7 = vector.broadcast %cst_3 : f32 to vector<8x1xf32>
    %8 = arith.divf %6, %7 : vector<8x1xf32>
    %9 = vector.broadcast %8 : vector<8x1xf32> to vector<8x32xf32>
    %10 = arith.subf %4, %9 : vector<8x32xf32>
    %11 = arith.mulf %10, %10 : vector<8x32xf32>
    %cst_4 = arith.constant dense<0.000000e+00> : vector<8xf32>
    %12 = vector.multi_reduction <add>, %11, %cst_4 [1] : vector<8x32xf32> to vector<8xf32>
    %13 = vector.shape_cast %12 : vector<8xf32> to vector<8x1xf32>
    %cst_5 = arith.constant 3.200000e+01 : f32
    %14 = vector.broadcast %cst_5 : f32 to vector<8x1xf32>
    %15 = arith.divf %13, %14 : vector<8x1xf32>
    %16 = vector.broadcast %8 : vector<8x1xf32> to vector<8x32xf32>
    %17 = arith.subf %4, %16 : vector<8x32xf32>
    %cst_6 = arith.constant 9.99999974E-6 : f32
    %18 = vector.broadcast %cst_6 : f32 to vector<8x1xf32>
    %19 = arith.addf %15, %18 : vector<8x1xf32>
    %20 = math.rsqrt %19 : vector<8x1xf32>
    %21 = vector.broadcast %20 : vector<8x1xf32> to vector<8x32xf32>
    %22 = arith.mulf %17, %21 : vector<8x32xf32>
    %c0_7 = arith.constant 0 : index
    %c0_8 = arith.constant 0 : index
    %c0_9 = arith.constant 0 : index
    %23 = vector.load %arg3[%c0_7, %c0_8, %c0_9] : memref<1x1x32xf32, #tpu.memory_space<vmem>>, vector<1x1x32xf32>
    %24 = vector.shape_cast %23 : vector<1x1x32xf32> to vector<1x32xf32>
    %25 = vector.broadcast %24 : vector<1x32xf32> to vector<8x32xf32>
    %26 = arith.mulf %22, %25 : vector<8x32xf32>
    %c0_10 = arith.constant 0 : index
    %c0_11 = arith.constant 0 : index
    %c0_12 = arith.constant 0 : index
    %27 = vector.load %arg4[%c0_10, %c0_11, %c0_12] : memref<1x1x32xf32, #tpu.memory_space<vmem>>, vector<1x1x32xf32>
    %28 = vector.shape_cast %27 : vector<1x1x32xf32> to vector<1x32xf32>
    %29 = vector.broadcast %28 : vector<1x32xf32> to vector<8x32xf32>
    %30 = arith.addf %26, %29 : vector<8x32xf32>
    %31 = arith.truncf %30 : vector<8x32xf32> to vector<8x32xbf16>
    %cst_13 = arith.constant 0.000000e+00 : f32
    %32 = vector.broadcast %cst_13 : f32 to vector<8x32xf32>
    %c0_14 = arith.constant 0 : index
    %c0_15 = arith.constant 0 : index
    %c0_16 = arith.constant 0 : index
    %c0_17 = arith.constant 0 : index
    %33 = vector.load %arg5[%c0_14, %c0_15, %c0_16, %c0_17] : memref<1x4x32x8xbf16, #tpu.memory_space<vmem>>, vector<1x1x32x8xbf16>
    %34 = vector.shape_cast %33 : vector<1x1x32x8xbf16> to vector<32x8xbf16>
    %c0_18 = arith.constant 0 : index
    %c0_19 = arith.constant 0 : index
    %c0_20 = arith.constant 0 : index
    %c0_21 = arith.constant 0 : index
    %35 = vector.load %arg6[%c0_18, %c0_19, %c0_20, %c0_21] : memref<1x4x32x8xbf16, #tpu.memory_space<vmem>>, vector<1x1x32x8xbf16>
    %36 = vector.shape_cast %35 : vector<1x1x32x8xbf16> to vector<32x8xbf16>
    %c0_22 = arith.constant 0 : index
    %c0_23 = arith.constant 0 : index
    %c0_24 = arith.constant 0 : index
    %c0_25 = arith.constant 0 : index
    %37 = vector.load %arg7[%c0_22, %c0_23, %c0_24, %c0_25] : memref<1x4x32x8xbf16, #tpu.memory_space<vmem>>, vector<1x1x32x8xbf16>
    %38 = vector.shape_cast %37 : vector<1x1x32x8xbf16> to vector<32x8xbf16>
    %cst_26 = arith.constant dense<0.000000e+00> : vector<8x8xf32>
    %39 = tpu.matmul %31, %34, %cst_26 {dimension_numbers = #tpu.dot_dimension_numbers<[1], [0], [0], [1], [0, 0, 1, 1], [], []>} : vector<8x32xbf16>, vector<32x8xbf16>, vector<8x8xf32> -> vector<8x8xf32>
    %c0_27 = arith.constant 0 : index
    %c0_28 = arith.constant 0 : index
    %c0_29 = arith.constant 0 : index
    %c0_30 = arith.constant 0 : index
    %40 = vector.load %arg8[%c0_27, %c0_28, %c0_29, %c0_30] : memref<1x4x1x8xf32, #tpu.memory_space<vmem>>, vector<1x1x1x8xf32>
    %41 = vector.shape_cast %40 : vector<1x1x1x8xf32> to vector<1x8xf32>
    %42 = vector.broadcast %41 : vector<1x8xf32> to vector<8x8xf32>
    %43 = arith.addf %39, %42 : vector<8x8xf32>
    %cst_31 = arith.constant dense<0.000000e+00> : vector<8x8xf32>
    %44 = tpu.matmul %31, %36, %cst_31 {dimension_numbers = #tpu.dot_dimension_numbers<[1], [0], [0], [1], [0, 0, 1, 1], [], []>} : vector<8x32xbf16>, vector<32x8xbf16>, vector<8x8xf32> -> vector<8x8xf32>
    %c0_32 = arith.constant 0 : index
    %c0_33 = arith.constant 0 : index
    %c0_34 = arith.constant 0 : index
    %c0_35 = arith.constant 0 : index
    %45 = vector.load %arg9[%c0_32, %c0_33, %c0_34, %c0_35] : memref<1x4x1x8xf32, #tpu.memory_space<vmem>>, vector<1x1x1x8xf32>
    %46 = vector.shape_cast %45 : vector<1x1x1x8xf32> to vector<1x8xf32>
    %47 = vector.broadcast %46 : vector<1x8xf32> to vector<8x8xf32>
    %48 = arith.addf %44, %47 : vector<8x8xf32>
    %cst_36 = arith.constant dense<0.000000e+00> : vector<8x8xf32>
    %49 = tpu.matmul %31, %38, %cst_36 {dimension_numbers = #tpu.dot_dimension_numbers<[1], [0], [0], [1], [0, 0, 1, 1], [], []>} : vector<8x32xbf16>, vector<32x8xbf16>, vector<8x8xf32> -> vector<8x8xf32>
    %c0_37 = arith.constant 0 : index
    %c0_38 = arith.constant 0 : index
    %c0_39 = arith.constant 0 : index
    %c0_40 = arith.constant 0 : index
    %50 = vector.load %arg10[%c0_37, %c0_38, %c0_39, %c0_40] : memref<1x4x1x8xf32, #tpu.memory_space<vmem>>, vector<1x1x1x8xf32>
    %51 = vector.shape_cast %50 : vector<1x1x1x8xf32> to vector<1x8xf32>
    %52 = vector.broadcast %51 : vector<1x8xf32> to vector<8x8xf32>
    %53 = arith.addf %49, %52 : vector<8x8xf32>
    %cst_41 = arith.constant 0.353553385 : f32
    %54 = vector.broadcast %cst_41 : f32 to vector<8x8xf32>
    %55 = arith.mulf %43, %54 : vector<8x8xf32>
    %56 = vector.shape_cast %55 : vector<8x8xf32> to vector<1x8x8xf32>
    %57 = arith.truncf %56 : vector<1x8x8xf32> to vector<1x8x8xbf16>
    %58 = vector.shape_cast %48 : vector<8x8xf32> to vector<1x8x8xf32>
    %59 = arith.truncf %58 : vector<1x8x8xf32> to vector<1x8x8xbf16>
    %60 = vector.shape_cast %53 : vector<8x8xf32> to vector<1x8x8xf32>
    %61 = arith.truncf %60 : vector<1x8x8xf32> to vector<1x8x8xbf16>
    "tpu.trace_start"() <{level = 10 : i32, message = "bqd,bkd->bqk"}> : () -> ()
    %cst_42 = arith.constant dense<0.000000e+00> : vector<1x8x8xf32>
    %62 = tpu.matmul %57, %59, %cst_42 {dimension_numbers = #tpu.dot_dimension_numbers<[2], [2], [1], [1], [0, 0, 0, 1, 1, 1], [0], [0]>} : vector<1x8x8xbf16>, vector<1x8x8xbf16>, vector<1x8x8xf32> -> vector<1x8x8xf32>
    "tpu.trace_stop"() : () -> ()
    %cst_43 = arith.constant dense<0xFF800000> : vector<1x8xf32>
    %63 = vector.multi_reduction <maximumf>, %62, %cst_43 [2] : vector<1x8x8xf32> to vector<1x8xf32>
    %64 = vector.shape_cast %63 : vector<1x8xf32> to vector<1x8x1xf32>
    %65 = vector.broadcast %64 : vector<1x8x1xf32> to vector<1x8x8xf32>
    %66 = arith.subf %62, %65 : vector<1x8x8xf32>
    %67 = math.exp %66 : vector<1x8x8xf32>
    %cst_44 = arith.constant dense<0.000000e+00> : vector<1x8xf32>
    %68 = vector.multi_reduction <add>, %67, %cst_44 [2] : vector<1x8x8xf32> to vector<1x8xf32>
    %69 = vector.shape_cast %68 : vector<1x8xf32> to vector<1x8x1xf32>
    %70 = tpu.reciprocal %69 {approx = true} : vector<1x8x1xf32> -> vector<1x8x1xf32>
    %71 = vector.broadcast %70 : vector<1x8x1xf32> to vector<1x8x8xf32>
    %72 = arith.mulf %67, %71 : vector<1x8x8xf32>
    %73 = arith.truncf %72 : vector<1x8x8xf32> to vector<1x8x8xbf16>
    "tpu.trace_start"() <{level = 10 : i32, message = "bqk,bkd->bqd"}> : () -> ()
    %cst_45 = arith.constant dense<0.000000e+00> : vector<1x8x8xf32>
    %74 = tpu.matmul %73, %61, %cst_45 {dimension_numbers = #tpu.dot_dimension_numbers<[2], [1], [1], [2], [0, 0, 0, 1, 1, 2], [0], [0]>} : vector<1x8x8xbf16>, vector<1x8x8xbf16>, vector<1x8x8xf32> -> vector<1x8x8xf32>
    "tpu.trace_stop"() : () -> ()
    %75 = vector.shape_cast %74 : vector<1x8x8xf32> to vector<8x8xf32>
    %76 = arith.truncf %75 : vector<8x8xf32> to vector<8x8xbf16>
    %c0_46 = arith.constant 0 : index
    %c0_47 = arith.constant 0 : index
    %c0_48 = arith.constant 0 : index
    %c0_49 = arith.constant 0 : index
    %77 = vector.load %arg11[%c0_46, %c0_47, %c0_48, %c0_49] : memref<1x4x8x32xbf16, #tpu.memory_space<vmem>>, vector<1x1x8x32xbf16>
    %78 = vector.shape_cast %77 : vector<1x1x8x32xbf16> to vector<8x32xbf16>
    %cst_50 = arith.constant dense<0.000000e+00> : vector<8x32xf32>
    %79 = tpu.matmul %76, %78, %cst_50 {dimension_numbers = #tpu.dot_dimension_numbers<[1], [0], [0], [1], [0, 0, 1, 1], [], []>} : vector<8x8xbf16>, vector<8x32xbf16>, vector<8x32xf32> -> vector<8x32xf32>
    %80 = arith.addf %32, %79 : vector<8x32xf32>
    %c0_51 = arith.constant 0 : index
    %c1 = arith.constant 1 : index
    %c0_52 = arith.constant 0 : index
    %c0_53 = arith.constant 0 : index
    %81 = vector.load %arg5[%c0_51, %c1, %c0_52, %c0_53] : memref<1x4x32x8xbf16, #tpu.memory_space<vmem>>, vector<1x1x32x8xbf16>
    %82 = vector.shape_cast %81 : vector<1x1x32x8xbf16> to vector<32x8xbf16>
    %c0_54 = arith.constant 0 : index
    %c1_55 = arith.constant 1 : index
    %c0_56 = arith.constant 0 : index
    %c0_57 = arith.constant 0 : index
    %83 = vector.load %arg6[%c0_54, %c1_55, %c0_56, %c0_57] : memref<1x4x32x8xbf16, #tpu.memory_space<vmem>>, vector<1x1x32x8xbf16>
    %84 = vector.shape_cast %83 : vector<1x1x32x8xbf16> to vector<32x8xbf16>
    %c0_58 = arith.constant 0 : index
    %c1_59 = arith.constant 1 : index
    %c0_60 = arith.constant 0 : index
    %c0_61 = arith.constant 0 : index
    %85 = vector.load %arg7[%c0_58, %c1_59, %c0_60, %c0_61] : memref<1x4x32x8xbf16, #tpu.memory_space<vmem>>, vector<1x1x32x8xbf16>
    %86 = vector.shape_cast %85 : vector<1x1x32x8xbf16> to vector<32x8xbf16>
    %cst_62 = arith.constant dense<0.000000e+00> : vector<8x8xf32>
    %87 = tpu.matmul %31, %82, %cst_62 {dimension_numbers = #tpu.dot_dimension_numbers<[1], [0], [0], [1], [0, 0, 1, 1], [], []>} : vector<8x32xbf16>, vector<32x8xbf16>, vector<8x8xf32> -> vector<8x8xf32>
    %c0_63 = arith.constant 0 : index
    %c1_64 = arith.constant 1 : index
    %c0_65 = arith.constant 0 : index
    %c0_66 = arith.constant 0 : index
    %88 = vector.load %arg8[%c0_63, %c1_64, %c0_65, %c0_66] : memref<1x4x1x8xf32, #tpu.memory_space<vmem>>, vector<1x1x1x8xf32>
    %89 = vector.shape_cast %88 : vector<1x1x1x8xf32> to vector<1x8xf32>
    %90 = vector.broadcast %89 : vector<1x8xf32> to vector<8x8xf32>
    %91 = arith.addf %87, %90 : vector<8x8xf32>
    %cst_67 = arith.constant dense<0.000000e+00> : vector<8x8xf32>
    %92 = tpu.matmul %31, %84, %cst_67 {dimension_numbers = #tpu.dot_dimension_numbers<[1], [0], [0], [1], [0, 0, 1, 1], [], []>} : vector<8x32xbf16>, vector<32x8xbf16>, vector<8x8xf32> -> vector<8x8xf32>
    %c0_68 = arith.constant 0 : index
    %c1_69 = arith.constant 1 : index
    %c0_70 = arith.constant 0 : index
    %c0_71 = arith.constant 0 : index
    %93 = vector.load %arg9[%c0_68, %c1_69, %c0_70, %c0_71] : memref<1x4x1x8xf32, #tpu.memory_space<vmem>>, vector<1x1x1x8xf32>
    %94 = vector.shape_cast %93 : vector<1x1x1x8xf32> to vector<1x8xf32>
    %95 = vector.broadcast %94 : vector<1x8xf32> to vector<8x8xf32>
    %96 = arith.addf %92, %95 : vector<8x8xf32>
    %cst_72 = arith.constant dense<0.000000e+00> : vector<8x8xf32>
    %97 = tpu.matmul %31, %86, %cst_72 {dimension_numbers = #tpu.dot_dimension_numbers<[1], [0], [0], [1], [0, 0, 1, 1], [], []>} : vector<8x32xbf16>, vector<32x8xbf16>, vector<8x8xf32> -> vector<8x8xf32>
    %c0_73 = arith.constant 0 : index
    %c1_74 = arith.constant 1 : index
    %c0_75 = arith.constant 0 : index
    %c0_76 = arith.constant 0 : index
    %98 = vector.load %arg10[%c0_73, %c1_74, %c0_75, %c0_76] : memref<1x4x1x8xf32, #tpu.memory_space<vmem>>, vector<1x1x1x8xf32>
    %99 = vector.shape_cast %98 : vector<1x1x1x8xf32> to vector<1x8xf32>
    %100 = vector.broadcast %99 : vector<1x8xf32> to vector<8x8xf32>
    %101 = arith.addf %97, %100 : vector<8x8xf32>
    %cst_77 = arith.constant 0.353553385 : f32
    %102 = vector.broadcast %cst_77 : f32 to vector<8x8xf32>
    %103 = arith.mulf %91, %102 : vector<8x8xf32>
    %104 = vector.shape_cast %103 : vector<8x8xf32> to vector<1x8x8xf32>
    %105 = arith.truncf %104 : vector<1x8x8xf32> to vector<1x8x8xbf16>
    %106 = vector.shape_cast %96 : vector<8x8xf32> to vector<1x8x8xf32>
    %107 = arith.truncf %106 : vector<1x8x8xf32> to vector<1x8x8xbf16>
    %108 = vector.shape_cast %101 : vector<8x8xf32> to vector<1x8x8xf32>
    %109 = arith.truncf %108 : vector<1x8x8xf32> to vector<1x8x8xbf16>
    "tpu.trace_start"() <{level = 10 : i32, message = "bqd,bkd->bqk"}> : () -> ()
    %cst_78 = arith.constant dense<0.000000e+00> : vector<1x8x8xf32>
    %110 = tpu.matmul %105, %107, %cst_78 {dimension_numbers = #tpu.dot_dimension_numbers<[2], [2], [1], [1], [0, 0, 0, 1, 1, 1], [0], [0]>} : vector<1x8x8xbf16>, vector<1x8x8xbf16>, vector<1x8x8xf32> -> vector<1x8x8xf32>
    "tpu.trace_stop"() : () -> ()
    %cst_79 = arith.constant dense<0xFF800000> : vector<1x8xf32>
    %111 = vector.multi_reduction <maximumf>, %110, %cst_79 [2] : vector<1x8x8xf32> to vector<1x8xf32>
    %112 = vector.shape_cast %111 : vector<1x8xf32> to vector<1x8x1xf32>
    %113 = vector.broadcast %112 : vector<1x8x1xf32> to vector<1x8x8xf32>
    %114 = arith.subf %110, %113 : vector<1x8x8xf32>
    %115 = math.exp %114 : vector<1x8x8xf32>
    %cst_80 = arith.constant dense<0.000000e+00> : vector<1x8xf32>
    %116 = vector.multi_reduction <add>, %115, %cst_80 [2] : vector<1x8x8xf32> to vector<1x8xf32>
    %117 = vector.shape_cast %116 : vector<1x8xf32> to vector<1x8x1xf32>
    %118 = tpu.reciprocal %117 {approx = true} : vector<1x8x1xf32> -> vector<1x8x1xf32>
    %119 = vector.broadcast %118 : vector<1x8x1xf32> to vector<1x8x8xf32>
    %120 = arith.mulf %115, %119 : vector<1x8x8xf32>
    %121 = arith.truncf %120 : vector<1x8x8xf32> to vector<1x8x8xbf16>
    "tpu.trace_start"() <{level = 10 : i32, message = "bqk,bkd->bqd"}> : () -> ()
    %cst_81 = arith.constant dense<0.000000e+00> : vector<1x8x8xf32>
    %122 = tpu.matmul %121, %109, %cst_81 {dimension_numbers = #tpu.dot_dimension_numbers<[2], [1], [1], [2], [0, 0, 0, 1, 1, 2], [0], [0]>} : vector<1x8x8xbf16>, vector<1x8x8xbf16>, vector<1x8x8xf32> -> vector<1x8x8xf32>
    "tpu.trace_stop"() : () -> ()
    %123 = vector.shape_cast %122 : vector<1x8x8xf32> to vector<8x8xf32>
    %124 = arith.truncf %123 : vector<8x8xf32> to vector<8x8xbf16>
    %c0_82 = arith.constant 0 : index
    %c1_83 = arith.constant 1 : index
    %c0_84 = arith.constant 0 : index
    %c0_85 = arith.constant 0 : index
    %125 = vector.load %arg11[%c0_82, %c1_83, %c0_84, %c0_85] : memref<1x4x8x32xbf16, #tpu.memory_space<vmem>>, vector<1x1x8x32xbf16>
    %126 = vector.shape_cast %125 : vector<1x1x8x32xbf16> to vector<8x32xbf16>
    %cst_86 = arith.constant dense<0.000000e+00> : vector<8x32xf32>
    %127 = tpu.matmul %124, %126, %cst_86 {dimension_numbers = #tpu.dot_dimension_numbers<[1], [0], [0], [1], [0, 0, 1, 1], [], []>} : vector<8x8xbf16>, vector<8x32xbf16>, vector<8x32xf32> -> vector<8x32xf32>
    %128 = arith.addf %80, %127 : vector<8x32xf32>
    %c0_87 = arith.constant 0 : index
    %c2 = arith.constant 2 : index
    %c0_88 = arith.constant 0 : index
    %c0_89 = arith.constant 0 : index
    %129 = vector.load %arg5[%c0_87, %c2, %c0_88, %c0_89] : memref<1x4x32x8xbf16, #tpu.memory_space<vmem>>, vector<1x1x32x8xbf16>
    %130 = vector.shape_cast %129 : vector<1x1x32x8xbf16> to vector<32x8xbf16>
    %c0_90 = arith.constant 0 : index
    %c2_91 = arith.constant 2 : index
    %c0_92 = arith.constant 0 : index
    %c0_93 = arith.constant 0 : index
    %131 = vector.load %arg6[%c0_90, %c2_91, %c0_92, %c0_93] : memref<1x4x32x8xbf16, #tpu.memory_space<vmem>>, vector<1x1x32x8xbf16>
    %132 = vector.shape_cast %131 : vector<1x1x32x8xbf16> to vector<32x8xbf16>
    %c0_94 = arith.constant 0 : index
    %c2_95 = arith.constant 2 : index
    %c0_96 = arith.constant 0 : index
    %c0_97 = arith.constant 0 : index
    %133 = vector.load %arg7[%c0_94, %c2_95, %c0_96, %c0_97] : memref<1x4x32x8xbf16, #tpu.memory_space<vmem>>, vector<1x1x32x8xbf16>
    %134 = vector.shape_cast %133 : vector<1x1x32x8xbf16> to vector<32x8xbf16>
    %cst_98 = arith.constant dense<0.000000e+00> : vector<8x8xf32>
    %135 = tpu.matmul %31, %130, %cst_98 {dimension_numbers = #tpu.dot_dimension_numbers<[1], [0], [0], [1], [0, 0, 1, 1], [], []>} : vector<8x32xbf16>, vector<32x8xbf16>, vector<8x8xf32> -> vector<8x8xf32>
    %c0_99 = arith.constant 0 : index
    %c2_100 = arith.constant 2 : index
    %c0_101 = arith.constant 0 : index
    %c0_102 = arith.constant 0 : index
    %136 = vector.load %arg8[%c0_99, %c2_100, %c0_101, %c0_102] : memref<1x4x1x8xf32, #tpu.memory_space<vmem>>, vector<1x1x1x8xf32>
    %137 = vector.shape_cast %136 : vector<1x1x1x8xf32> to vector<1x8xf32>
    %138 = vector.broadcast %137 : vector<1x8xf32> to vector<8x8xf32>
    %139 = arith.addf %135, %138 : vector<8x8xf32>
    %cst_103 = arith.constant dense<0.000000e+00> : vector<8x8xf32>
    %140 = tpu.matmul %31, %132, %cst_103 {dimension_numbers = #tpu.dot_dimension_numbers<[1], [0], [0], [1], [0, 0, 1, 1], [], []>} : vector<8x32xbf16>, vector<32x8xbf16>, vector<8x8xf32> -> vector<8x8xf32>
    %c0_104 = arith.constant 0 : index
    %c2_105 = arith.constant 2 : index
    %c0_106 = arith.constant 0 : index
    %c0_107 = arith.constant 0 : index
    %141 = vector.load %arg9[%c0_104, %c2_105, %c0_106, %c0_107] : memref<1x4x1x8xf32, #tpu.memory_space<vmem>>, vector<1x1x1x8xf32>
    %142 = vector.shape_cast %141 : vector<1x1x1x8xf32> to vector<1x8xf32>
    %143 = vector.broadcast %142 : vector<1x8xf32> to vector<8x8xf32>
    %144 = arith.addf %140, %143 : vector<8x8xf32>
    %cst_108 = arith.constant dense<0.000000e+00> : vector<8x8xf32>
    %145 = tpu.matmul %31, %134, %cst_108 {dimension_numbers = #tpu.dot_dimension_numbers<[1], [0], [0], [1], [0, 0, 1, 1], [], []>} : vector<8x32xbf16>, vector<32x8xbf16>, vector<8x8xf32> -> vector<8x8xf32>
    %c0_109 = arith.constant 0 : index
    %c2_110 = arith.constant 2 : index
    %c0_111 = arith.constant 0 : index
    %c0_112 = arith.constant 0 : index
    %146 = vector.load %arg10[%c0_109, %c2_110, %c0_111, %c0_112] : memref<1x4x1x8xf32, #tpu.memory_space<vmem>>, vector<1x1x1x8xf32>
    %147 = vector.shape_cast %146 : vector<1x1x1x8xf32> to vector<1x8xf32>
    %148 = vector.broadcast %147 : vector<1x8xf32> to vector<8x8xf32>
    %149 = arith.addf %145, %148 : vector<8x8xf32>
    %cst_113 = arith.constant 0.353553385 : f32
    %150 = vector.broadcast %cst_113 : f32 to vector<8x8xf32>
    %151 = arith.mulf %139, %150 : vector<8x8xf32>
    %152 = vector.shape_cast %151 : vector<8x8xf32> to vector<1x8x8xf32>
    %153 = arith.truncf %152 : vector<1x8x8xf32> to vector<1x8x8xbf16>
    %154 = vector.shape_cast %144 : vector<8x8xf32> to vector<1x8x8xf32>
    %155 = arith.truncf %154 : vector<1x8x8xf32> to vector<1x8x8xbf16>
    %156 = vector.shape_cast %149 : vector<8x8xf32> to vector<1x8x8xf32>
    %157 = arith.truncf %156 : vector<1x8x8xf32> to vector<1x8x8xbf16>
    "tpu.trace_start"() <{level = 10 : i32, message = "bqd,bkd->bqk"}> : () -> ()
    %cst_114 = arith.constant dense<0.000000e+00> : vector<1x8x8xf32>
    %158 = tpu.matmul %153, %155, %cst_114 {dimension_numbers = #tpu.dot_dimension_numbers<[2], [2], [1], [1], [0, 0, 0, 1, 1, 1], [0], [0]>} : vector<1x8x8xbf16>, vector<1x8x8xbf16>, vector<1x8x8xf32> -> vector<1x8x8xf32>
    "tpu.trace_stop"() : () -> ()
    %cst_115 = arith.constant dense<0xFF800000> : vector<1x8xf32>
    %159 = vector.multi_reduction <maximumf>, %158, %cst_115 [2] : vector<1x8x8xf32> to vector<1x8xf32>
    %160 = vector.shape_cast %159 : vector<1x8xf32> to vector<1x8x1xf32>
    %161 = vector.broadcast %160 : vector<1x8x1xf32> to vector<1x8x8xf32>
    %162 = arith.subf %158, %161 : vector<1x8x8xf32>
    %163 = math.exp %162 : vector<1x8x8xf32>
    %cst_116 = arith.constant dense<0.000000e+00> : vector<1x8xf32>
    %164 = vector.multi_reduction <add>, %163, %cst_116 [2] : vector<1x8x8xf32> to vector<1x8xf32>
    %165 = vector.shape_cast %164 : vector<1x8xf32> to vector<1x8x1xf32>
    %166 = tpu.reciprocal %165 {approx = true} : vector<1x8x1xf32> -> vector<1x8x1xf32>
    %167 = vector.broadcast %166 : vector<1x8x1xf32> to vector<1x8x8xf32>
    %168 = arith.mulf %163, %167 : vector<1x8x8xf32>
    %169 = arith.truncf %168 : vector<1x8x8xf32> to vector<1x8x8xbf16>
    "tpu.trace_start"() <{level = 10 : i32, message = "bqk,bkd->bqd"}> : () -> ()
    %cst_117 = arith.constant dense<0.000000e+00> : vector<1x8x8xf32>
    %170 = tpu.matmul %169, %157, %cst_117 {dimension_numbers = #tpu.dot_dimension_numbers<[2], [1], [1], [2], [0, 0, 0, 1, 1, 2], [0], [0]>} : vector<1x8x8xbf16>, vector<1x8x8xbf16>, vector<1x8x8xf32> -> vector<1x8x8xf32>
    "tpu.trace_stop"() : () -> ()
    %171 = vector.shape_cast %170 : vector<1x8x8xf32> to vector<8x8xf32>
    %172 = arith.truncf %171 : vector<8x8xf32> to vector<8x8xbf16>
    %c0_118 = arith.constant 0 : index
    %c2_119 = arith.constant 2 : index
    %c0_120 = arith.constant 0 : index
    %c0_121 = arith.constant 0 : index
    %173 = vector.load %arg11[%c0_118, %c2_119, %c0_120, %c0_121] : memref<1x4x8x32xbf16, #tpu.memory_space<vmem>>, vector<1x1x8x32xbf16>
    %174 = vector.shape_cast %173 : vector<1x1x8x32xbf16> to vector<8x32xbf16>
    %cst_122 = arith.constant dense<0.000000e+00> : vector<8x32xf32>
    %175 = tpu.matmul %172, %174, %cst_122 {dimension_numbers = #tpu.dot_dimension_numbers<[1], [0], [0], [1], [0, 0, 1, 1], [], []>} : vector<8x8xbf16>, vector<8x32xbf16>, vector<8x32xf32> -> vector<8x32xf32>
    %176 = arith.addf %128, %175 : vector<8x32xf32>
    %c0_123 = arith.constant 0 : index
    %c3 = arith.constant 3 : index
    %c0_124 = arith.constant 0 : index
    %c0_125 = arith.constant 0 : index
    %177 = vector.load %arg5[%c0_123, %c3, %c0_124, %c0_125] : memref<1x4x32x8xbf16, #tpu.memory_space<vmem>>, vector<1x1x32x8xbf16>
    %178 = vector.shape_cast %177 : vector<1x1x32x8xbf16> to vector<32x8xbf16>
    %c0_126 = arith.constant 0 : index
    %c3_127 = arith.constant 3 : index
    %c0_128 = arith.constant 0 : index
    %c0_129 = arith.constant 0 : index
    %179 = vector.load %arg6[%c0_126, %c3_127, %c0_128, %c0_129] : memref<1x4x32x8xbf16, #tpu.memory_space<vmem>>, vector<1x1x32x8xbf16>
    %180 = vector.shape_cast %179 : vector<1x1x32x8xbf16> to vector<32x8xbf16>
    %c0_130 = arith.constant 0 : index
    %c3_131 = arith.constant 3 : index
    %c0_132 = arith.constant 0 : index
    %c0_133 = arith.constant 0 : index
    %181 = vector.load %arg7[%c0_130, %c3_131, %c0_132, %c0_133] : memref<1x4x32x8xbf16, #tpu.memory_space<vmem>>, vector<1x1x32x8xbf16>
    %182 = vector.shape_cast %181 : vector<1x1x32x8xbf16> to vector<32x8xbf16>
    %cst_134 = arith.constant dense<0.000000e+00> : vector<8x8xf32>
    %183 = tpu.matmul %31, %178, %cst_134 {dimension_numbers = #tpu.dot_dimension_numbers<[1], [0], [0], [1], [0, 0, 1, 1], [], []>} : vector<8x32xbf16>, vector<32x8xbf16>, vector<8x8xf32> -> vector<8x8xf32>
    %c0_135 = arith.constant 0 : index
    %c3_136 = arith.constant 3 : index
    %c0_137 = arith.constant 0 : index
    %c0_138 = arith.constant 0 : index
    %184 = vector.load %arg8[%c0_135, %c3_136, %c0_137, %c0_138] : memref<1x4x1x8xf32, #tpu.memory_space<vmem>>, vector<1x1x1x8xf32>
    %185 = vector.shape_cast %184 : vector<1x1x1x8xf32> to vector<1x8xf32>
    %186 = vector.broadcast %185 : vector<1x8xf32> to vector<8x8xf32>
    %187 = arith.addf %183, %186 : vector<8x8xf32>
    %cst_139 = arith.constant dense<0.000000e+00> : vector<8x8xf32>
    %188 = tpu.matmul %31, %180, %cst_139 {dimension_numbers = #tpu.dot_dimension_numbers<[1], [0], [0], [1], [0, 0, 1, 1], [], []>} : vector<8x32xbf16>, vector<32x8xbf16>, vector<8x8xf32> -> vector<8x8xf32>
    %c0_140 = arith.constant 0 : index
    %c3_141 = arith.constant 3 : index
    %c0_142 = arith.constant 0 : index
    %c0_143 = arith.constant 0 : index
    %189 = vector.load %arg9[%c0_140, %c3_141, %c0_142, %c0_143] : memref<1x4x1x8xf32, #tpu.memory_space<vmem>>, vector<1x1x1x8xf32>
    %190 = vector.shape_cast %189 : vector<1x1x1x8xf32> to vector<1x8xf32>
    %191 = vector.broadcast %190 : vector<1x8xf32> to vector<8x8xf32>
    %192 = arith.addf %188, %191 : vector<8x8xf32>
    %cst_144 = arith.constant dense<0.000000e+00> : vector<8x8xf32>
    %193 = tpu.matmul %31, %182, %cst_144 {dimension_numbers = #tpu.dot_dimension_numbers<[1], [0], [0], [1], [0, 0, 1, 1], [], []>} : vector<8x32xbf16>, vector<32x8xbf16>, vector<8x8xf32> -> vector<8x8xf32>
    %c0_145 = arith.constant 0 : index
    %c3_146 = arith.constant 3 : index
    %c0_147 = arith.constant 0 : index
    %c0_148 = arith.constant 0 : index
    %194 = vector.load %arg10[%c0_145, %c3_146, %c0_147, %c0_148] : memref<1x4x1x8xf32, #tpu.memory_space<vmem>>, vector<1x1x1x8xf32>
    %195 = vector.shape_cast %194 : vector<1x1x1x8xf32> to vector<1x8xf32>
    %196 = vector.broadcast %195 : vector<1x8xf32> to vector<8x8xf32>
    %197 = arith.addf %193, %196 : vector<8x8xf32>
    %cst_149 = arith.constant 0.353553385 : f32
    %198 = vector.broadcast %cst_149 : f32 to vector<8x8xf32>
    %199 = arith.mulf %187, %198 : vector<8x8xf32>
    %200 = vector.shape_cast %199 : vector<8x8xf32> to vector<1x8x8xf32>
    %201 = arith.truncf %200 : vector<1x8x8xf32> to vector<1x8x8xbf16>
    %202 = vector.shape_cast %192 : vector<8x8xf32> to vector<1x8x8xf32>
    %203 = arith.truncf %202 : vector<1x8x8xf32> to vector<1x8x8xbf16>
    %204 = vector.shape_cast %197 : vector<8x8xf32> to vector<1x8x8xf32>
    %205 = arith.truncf %204 : vector<1x8x8xf32> to vector<1x8x8xbf16>
    "tpu.trace_start"() <{level = 10 : i32, message = "bqd,bkd->bqk"}> : () -> ()
    %cst_150 = arith.constant dense<0.000000e+00> : vector<1x8x8xf32>
    %206 = tpu.matmul %201, %203, %cst_150 {dimension_numbers = #tpu.dot_dimension_numbers<[2], [2], [1], [1], [0, 0, 0, 1, 1, 1], [0], [0]>} : vector<1x8x8xbf16>, vector<1x8x8xbf16>, vector<1x8x8xf32> -> vector<1x8x8xf32>
    "tpu.trace_stop"() : () -> ()
    %cst_151 = arith.constant dense<0xFF800000> : vector<1x8xf32>
    %207 = vector.multi_reduction <maximumf>, %206, %cst_151 [2] : vector<1x8x8xf32> to vector<1x8xf32>
    %208 = vector.shape_cast %207 : vector<1x8xf32> to vector<1x8x1xf32>
    %209 = vector.broadcast %208 : vector<1x8x1xf32> to vector<1x8x8xf32>
    %210 = arith.subf %206, %209 : vector<1x8x8xf32>
    %211 = math.exp %210 : vector<1x8x8xf32>
    %cst_152 = arith.constant dense<0.000000e+00> : vector<1x8xf32>
    %212 = vector.multi_reduction <add>, %211, %cst_152 [2] : vector<1x8x8xf32> to vector<1x8xf32>
    %213 = vector.shape_cast %212 : vector<1x8xf32> to vector<1x8x1xf32>
    %214 = tpu.reciprocal %213 {approx = true} : vector<1x8x1xf32> -> vector<1x8x1xf32>
    %215 = vector.broadcast %214 : vector<1x8x1xf32> to vector<1x8x8xf32>
    %216 = arith.mulf %211, %215 : vector<1x8x8xf32>
    %217 = arith.truncf %216 : vector<1x8x8xf32> to vector<1x8x8xbf16>
    "tpu.trace_start"() <{level = 10 : i32, message = "bqk,bkd->bqd"}> : () -> ()
    %cst_153 = arith.constant dense<0.000000e+00> : vector<1x8x8xf32>
    %218 = tpu.matmul %217, %205, %cst_153 {dimension_numbers = #tpu.dot_dimension_numbers<[2], [1], [1], [2], [0, 0, 0, 1, 1, 2], [0], [0]>} : vector<1x8x8xbf16>, vector<1x8x8xbf16>, vector<1x8x8xf32> -> vector<1x8x8xf32>
    "tpu.trace_stop"() : () -> ()
    %219 = vector.shape_cast %218 : vector<1x8x8xf32> to vector<8x8xf32>
    %220 = arith.truncf %219 : vector<8x8xf32> to vector<8x8xbf16>
    %c0_154 = arith.constant 0 : index
    %c3_155 = arith.constant 3 : index
    %c0_156 = arith.constant 0 : index
    %c0_157 = arith.constant 0 : index
    %221 = vector.load %arg11[%c0_154, %c3_155, %c0_156, %c0_157] : memref<1x4x8x32xbf16, #tpu.memory_space<vmem>>, vector<1x1x8x32xbf16>
    %222 = vector.shape_cast %221 : vector<1x1x8x32xbf16> to vector<8x32xbf16>
    %cst_158 = arith.constant dense<0.000000e+00> : vector<8x32xf32>
    %223 = tpu.matmul %220, %222, %cst_158 {dimension_numbers = #tpu.dot_dimension_numbers<[1], [0], [0], [1], [0, 0, 1, 1], [], []>} : vector<8x8xbf16>, vector<8x32xbf16>, vector<8x32xf32> -> vector<8x32xf32>
    %224 = arith.addf %176, %223 : vector<8x32xf32>
    %225 = arith.addf %4, %224 : vector<8x32xf32>
    %c0_159 = arith.constant 0 : index
    %c0_160 = arith.constant 0 : index
    %c0_161 = arith.constant 0 : index
    %226 = vector.load %arg12[%c0_159, %c0_160, %c0_161] : memref<1x1x32xf32, #tpu.memory_space<vmem>>, vector<1x1x32xf32>
    %227 = vector.shape_cast %226 : vector<1x1x32xf32> to vector<1x32xf32>
    %228 = vector.broadcast %227 : vector<1x32xf32> to vector<8x32xf32>
    %229 = arith.addf %225, %228 : vector<8x32xf32>
    %cst_162 = arith.constant dense<0.000000e+00> : vector<8xf32>
    %230 = vector.multi_reduction <add>, %229, %cst_162 [1] : vector<8x32xf32> to vector<8xf32>
    %231 = vector.shape_cast %230 : vector<8xf32> to vector<8x1xf32>
    %cst_163 = arith.constant 3.200000e+01 : f32
    %232 = vector.broadcast %cst_163 : f32 to vector<8x1xf32>
    %233 = arith.divf %231, %232 : vector<8x1xf32>
    %234 = vector.broadcast %233 : vector<8x1xf32> to vector<8x32xf32>
    %235 = arith.subf %229, %234 : vector<8x32xf32>
    %236 = arith.mulf %235, %235 : vector<8x32xf32>
    %cst_164 = arith.constant dense<0.000000e+00> : vector<8xf32>
    %237 = vector.multi_reduction <add>, %236, %cst_164 [1] : vector<8x32xf32> to vector<8xf32>
    %238 = vector.shape_cast %237 : vector<8xf32> to vector<8x1xf32>
    %cst_165 = arith.constant 3.200000e+01 : f32
    %239 = vector.broadcast %cst_165 : f32 to vector<8x1xf32>
    %240 = arith.divf %238, %239 : vector<8x1xf32>
    %241 = vector.broadcast %233 : vector<8x1xf32> to vector<8x32xf32>
    %242 = arith.subf %229, %241 : vector<8x32xf32>
    %cst_166 = arith.constant 9.99999974E-6 : f32
    %243 = vector.broadcast %cst_166 : f32 to vector<8x1xf32>
    %244 = arith.addf %240, %243 : vector<8x1xf32>
    %245 = math.rsqrt %244 : vector<8x1xf32>
    %246 = vector.broadcast %245 : vector<8x1xf32> to vector<8x32xf32>
    %247 = arith.mulf %242, %246 : vector<8x32xf32>
    %c0_167 = arith.constant 0 : index
    %c0_168 = arith.constant 0 : index
    %c0_169 = arith.constant 0 : index
    %248 = vector.load %arg13[%c0_167, %c0_168, %c0_169] : memref<1x1x32xf32, #tpu.memory_space<vmem>>, vector<1x1x32xf32>
    %249 = vector.shape_cast %248 : vector<1x1x32xf32> to vector<1x32xf32>
    %250 = vector.broadcast %249 : vector<1x32xf32> to vector<8x32xf32>
    %251 = arith.mulf %247, %250 : vector<8x32xf32>
    %c0_170 = arith.constant 0 : index
    %c0_171 = arith.constant 0 : index
    %c0_172 = arith.constant 0 : index
    %252 = vector.load %arg14[%c0_170, %c0_171, %c0_172] : memref<1x1x32xf32, #tpu.memory_space<vmem>>, vector<1x1x32xf32>
    %253 = vector.shape_cast %252 : vector<1x1x32xf32> to vector<1x32xf32>
    %254 = vector.broadcast %253 : vector<1x32xf32> to vector<8x32xf32>
    %255 = arith.addf %251, %254 : vector<8x32xf32>
    %256 = arith.truncf %255 : vector<8x32xf32> to vector<8x32xbf16>
    %c0_173 = arith.constant 0 : index
    %c0_174 = arith.constant 0 : index
    %c0_175 = arith.constant 0 : index
    %257 = vector.load %arg15[%c0_173, %c0_174, %c0_175] : memref<1x32x128xbf16, #tpu.memory_space<vmem>>, vector<1x32x128xbf16>
    %258 = vector.shape_cast %257 : vector<1x32x128xbf16> to vector<32x128xbf16>
    %cst_176 = arith.constant dense<0.000000e+00> : vector<8x128xf32>
    %259 = tpu.matmul %256, %258, %cst_176 {dimension_numbers = #tpu.dot_dimension_numbers<[1], [0], [0], [1], [0, 0, 1, 1], [], []>} : vector<8x32xbf16>, vector<32x128xbf16>, vector<8x128xf32> -> vector<8x128xf32>
    %c0_177 = arith.constant 0 : index
    %c0_178 = arith.constant 0 : index
    %c0_179 = arith.constant 0 : index
    %260 = vector.load %arg16[%c0_177, %c0_178, %c0_179] : memref<1x1x128xf32, #tpu.memory_space<vmem>>, vector<1x1x128xf32>
    %261 = vector.shape_cast %260 : vector<1x1x128xf32> to vector<1x128xf32>
    %262 = vector.broadcast %261 : vector<1x128xf32> to vector<8x128xf32>
    %263 = arith.addf %259, %262 : vector<8x128xf32>
    %cst_180 = arith.constant 0.000000e+00 : f32
    %264 = vector.broadcast %cst_180 : f32 to vector<8x128xf32>
    %265 = arith.maximumf %263, %264 : vector<8x128xf32>
    %266 = arith.truncf %265 : vector<8x128xf32> to vector<8x128xbf16>
    %c0_181 = arith.constant 0 : index
    %c0_182 = arith.constant 0 : index
    %c0_183 = arith.constant 0 : index
    %267 = vector.load %arg17[%c0_181, %c0_182, %c0_183] : memref<1x128x32xbf16, #tpu.memory_space<vmem>>, vector<1x128x32xbf16>
    %268 = vector.shape_cast %267 : vector<1x128x32xbf16> to vector<128x32xbf16>
    %cst_184 = arith.constant dense<0.000000e+00> : vector<8x32xf32>
    %269 = tpu.matmul %266, %268, %cst_184 {dimension_numbers = #tpu.dot_dimension_numbers<[1], [0], [0], [1], [0, 0, 1, 1], [], []>} : vector<8x128xbf16>, vector<128x32xbf16>, vector<8x32xf32> -> vector<8x32xf32>
    %c0_185 = arith.constant 0 : index
    %c0_186 = arith.constant 0 : index
    %c0_187 = arith.constant 0 : index
    %270 = vector.load %arg18[%c0_185, %c0_186, %c0_187] : memref<1x1x32xf32, #tpu.memory_space<vmem>>, vector<1x1x32xf32>
    %271 = vector.shape_cast %270 : vector<1x1x32xf32> to vector<1x32xf32>
    %272 = vector.broadcast %271 : vector<1x32xf32> to vector<8x32xf32>
    %273 = arith.addf %269, %272 : vector<8x32xf32>
    %274 = arith.addf %229, %273 : vector<8x32xf32>
    %275 = vector.shape_cast %274 : vector<8x32xf32> to vector<1x8x32xf32>
    %c0_188 = arith.constant 0 : index
    %c0_189 = arith.constant 0 : index
    %c0_190 = arith.constant 0 : index
    %276 = vector.load %arg20[%c0_188, %c0_189, %c0_190] : memref<1x8x32xf32, #tpu.memory_space<vmem>>, vector<1x8x32xf32>
    tpu.vector_store %arg20[%c0_188, %c0_189, %c0_190], %275 {strides = array<i32>} : memref<1x8x32xf32, #tpu.memory_space<vmem>>, vector<1x8x32xf32>,
    %c1_i32 = arith.constant 1 : i32
    %277 = arith.cmpi eq, %arg1, %c1_i32 : i32
    %278 = arith.extui %277 : i1 to i32
    %c0_i32_191 = arith.constant 0 : i32
    %279 = arith.cmpi ne, %278, %c0_i32_191 : i32
    scf.if %279 {
      %cst_192 = arith.constant dense<0.000000e+00> : vector<1x32xf32>
      %280 = vector.multi_reduction <add>, %275, %cst_192 [1] : vector<1x8x32xf32> to vector<1x32xf32>
      %281 = vector.shape_cast %280 : vector<1x32xf32> to vector<1x1x32xf32>
      %cst_193 = arith.constant 8.000000e+00 : f32
      %282 = vector.broadcast %cst_193 : f32 to vector<1x1x32xf32>
      %283 = arith.divf %281, %282 : vector<1x1x32xf32>
      %c0_194 = arith.constant 0 : index
      %c0_195 = arith.constant 0 : index
      %c0_196 = arith.constant 0 : index
      %284 = vector.load %arg19[%c0_194, %c0_195, %c0_196] : memref<1x1x32xf32, #tpu.memory_space<vmem>>, vector<1x1x32xf32>
      tpu.vector_store %arg19[%c0_194, %c0_195, %c0_196], %283 {strides = array<i32>} : memref<1x1x32xf32, #tpu.memory_space<vmem>>, vector<1x1x32xf32>,
    } else {
    }
    return
  }
  func.func @transform_0(%arg0: i32, %arg1: i32) -> (i32, i32, i32) {
    %c0_i32 = arith.constant 0 : i32
    %c0_i32_0 = arith.constant 0 : i32
    %c0_i32_1 = arith.constant 0 : i32
    return %arg0, %c0_i32, %c0_i32_0 : i32, i32, i32
  }
  func.func @transform_1(%arg0: i32, %arg1: i32) -> (i32, i32, i32) {
    %c0_i32 = arith.constant 0 : i32
    %c0_i32_0 = arith.constant 0 : i32
    %c0_i32_1 = arith.constant 0 : i32
    return %arg1, %c0_i32, %c0_i32_0 : i32, i32, i32
  }
  func.func @transform_2(%arg0: i32, %arg1: i32) -> (i32, i32, i32) {
    %c0_i32 = arith.constant 0 : i32
    %c0_i32_0 = arith.constant 0 : i32
    %c0_i32_1 = arith.constant 0 : i32
    return %arg1, %c0_i32, %c0_i32_0 : i32, i32, i32
  }
  func.func @transform_3(%arg0: i32, %arg1: i32) -> (i32, i32, i32, i32) {
    %c0_i32 = arith.constant 0 : i32
    %c0_i32_0 = arith.constant 0 : i32
    %c0_i32_1 = arith.constant 0 : i32
    %c0_i32_2 = arith.constant 0 : i32
    return %arg1, %c0_i32, %c0_i32_0, %c0_i32_1 : i32, i32, i32, i32
  }
  func.func @transform_4(%arg0: i32, %arg1: i32) -> (i32, i32, i32, i32) {
    %c0_i32 = arith.constant 0 : i32
    %c0_i32_0 = arith.constant 0 : i32
    %c0_i32_1 = arith.constant 0 : i32
    %c0_i32_2 = arith.constant 0 : i32
    return %arg1, %c0_i32, %c0_i32_0, %c0_i32_1 : i32, i32, i32, i32
  }
  func.func @transform_5(%arg0: i32, %arg1: i32) -> (i32, i32, i32, i32) {
    %c0_i32 = arith.constant 0 : i32
    %c0_i32_0 = arith.constant 0 : i32
    %c0_i32_1 = arith.constant 0 : i32
    %c0_i32_2 = arith.constant 0 : i32
    return %arg1, %c0_i32, %c0_i32_0, %c0_i32_1 : i32, i32, i32, i32
  }
  func.func @transform_6(%arg0: i32, %arg1: i32) -> (i32, i32, i32, i32) {
    %c0_i32 = arith.constant 0 : i32
    %c0_i32_0 = arith.constant 0 : i32
    %c0_i32_1 = arith.constant 0 : i32
    %c0_i32_2 = arith.constant 0 : i32
    return %arg1, %c0_i32, %c0_i32_0, %c0_i32_1 : i32, i32, i32, i32
  }
  func.func @transform_7(%arg0: i32, %arg1: i32) -> (i32, i32, i32, i32) {
    %c0_i32 = arith.constant 0 : i32
    %c0_i32_0 = arith.constant 0 : i32
    %c0_i32_1 = arith.constant 0 : i32
    %c0_i32_2 = arith.constant 0 : i32
    return %arg1, %c0_i32, %c0_i32_0, %c0_i32_1 : i32, i32, i32, i32
  }
  func.func @transform_8(%arg0: i32, %arg1: i32) -> (i32, i32, i32, i32) {
    %c0_i32 = arith.constant 0 : i32
    %c0_i32_0 = arith.constant 0 : i32
    %c0_i32_1 = arith.constant 0 : i32
    %c0_i32_2 = arith.constant 0 : i32
    return %arg1, %c0_i32, %c0_i32_0, %c0_i32_1 : i32, i32, i32, i32
  }
  func.func @transform_9(%arg0: i32, %arg1: i32) -> (i32, i32, i32, i32) {
    %c0_i32 = arith.constant 0 : i32
    %c0_i32_0 = arith.constant 0 : i32
    %c0_i32_1 = arith.constant 0 : i32
    %c0_i32_2 = arith.constant 0 : i32
    return %arg1, %c0_i32, %c0_i32_0, %c0_i32_1 : i32, i32, i32, i32
  }
  func.func @transform_10(%arg0: i32, %arg1: i32) -> (i32, i32, i32) {
    %c0_i32 = arith.constant 0 : i32
    %c0_i32_0 = arith.constant 0 : i32
    %c0_i32_1 = arith.constant 0 : i32
    return %arg1, %c0_i32, %c0_i32_0 : i32, i32, i32
  }
  func.func @transform_11(%arg0: i32, %arg1: i32) -> (i32, i32, i32) {
    %c0_i32 = arith.constant 0 : i32
    %c0_i32_0 = arith.constant 0 : i32
    %c0_i32_1 = arith.constant 0 : i32
    return %arg1, %c0_i32, %c0_i32_0 : i32, i32, i32
  }
  func.func @transform_12(%arg0: i32, %arg1: i32) -> (i32, i32, i32) {
    %c0_i32 = arith.constant 0 : i32
    %c0_i32_0 = arith.constant 0 : i32
    %c0_i32_1 = arith.constant 0 : i32
    return %arg1, %c0_i32, %c0_i32_0 : i32, i32, i32
  }
  func.func @transform_13(%arg0: i32, %arg1: i32) -> (i32, i32, i32) {
    %c0_i32 = arith.constant 0 : i32
    %c0_i32_0 = arith.constant 0 : i32
    %c0_i32_1 = arith.constant 0 : i32
    return %arg1, %c0_i32, %c0_i32_0 : i32, i32, i32
  }
  func.func @transform_14(%arg0: i32, %arg1: i32) -> (i32, i32, i32) {
    %c0_i32 = arith.constant 0 : i32
    %c0_i32_0 = arith.constant 0 : i32
    %c0_i32_1 = arith.constant 0 : i32
    return %arg1, %c0_i32, %c0_i32_0 : i32, i32, i32
  }
  func.func @transform_15(%arg0: i32, %arg1: i32) -> (i32, i32, i32) {
    %c0_i32 = arith.constant 0 : i32
    %c0_i32_0 = arith.constant 0 : i32
    %c0_i32_1 = arith.constant 0 : i32
    return %arg1, %c0_i32, %c0_i32_0 : i32, i32, i32
  }
  func.func @transform_16(%arg0: i32, %arg1: i32) -> (i32, i32, i32) {
    %c0_i32 = arith.constant 0 : i32
    %c0_i32_0 = arith.constant 0 : i32
    %c0_i32_1 = arith.constant 0 : i32
    return %arg1, %c0_i32, %c0_i32_0 : i32, i32, i32
  }
  func.func @transform_17(%arg0: i32, %arg1: i32) -> (i32, i32, i32) {
    %c0_i32 = arith.constant 0 : i32
    %c0_i32_0 = arith.constant 0 : i32
    %c0_i32_1 = arith.constant 0 : i32
    return %arg0, %c0_i32, %c0_i32_0 : i32, i32, i32
  }
}

</mosaic_0001>

<bundles_post_ra>
// kernel: tpu_custom_call.1
= control target key start
LH: loop header
LB: loop body
LE: loop exit
PB: predicated region body
PF: predicated region fallthrough
CT: control target
= control target key end

     0   :  { %s3971_s0 = inlined_call_operand.vmem [shape: f32[2,8,32], index: 0, kind: input, shape index: {}]   ;;  %s3972_s1 = inlined_call_operand.vmem [shape: f32[2,1,32], index: 1, kind: input, shape index: {}]   ;;  %s3973_s2 = inlined_call_operand.vmem [shape: f32[2,1,32], index: 2, kind: input, shape index: {}]   ;;  %s3974_s3 = inlined_call_operand.vmem [shape: bf16[2,4,32,8], index: 3, kind: input, shape index: {}]   ;;  %s3975_s4 = inlined_call_operand.vmem [shape: bf16[2,4,32,8], index: 4, kind: input, shape index: {}]   ;;  %s3976_s5 = inlined_call_operand.vmem [shape: bf16[2,4,32,8], index: 5, kind: input, shape index: {}]   ;;  %s3977_s6 = inlined_call_operand.vmem [shape: f32[2,4,1,8], index: 6, kind: input, shape index: {}]   ;;  %s3978_s7 = inlined_call_operand.vmem [shape: f32[2,4,1,8], index: 7, kind: input, shape index: {}]   ;;  %s3979_s8 = inlined_call_operand.vmem [shape: f32[2,4,1,8], index: 8, kind: input, shape index: {}]   ;;  %s3980_s9 = inlined_call_operand.vmem [shape: bf16[2,4,8,32], index: 9, kind: input, shape index: {}]   ;;  %s3981_s10 = inlined_call_operand.vmem [shape: f32[2,1,32], index: 10, kind: input, shape index: {}]   ;;  %s3982_s11 = inlined_call_operand.vmem [shape: f32[2,1,32], index: 11, kind: input, shape index: {}]   ;;  %s3983_s12 = inlined_call_operand.vmem [shape: f32[2,1,32], index: 12, kind: input, shape index: {}]   ;;  %s3984_s13 = inlined_call_operand.vmem [shape: bf16[2,32,128], index: 13, kind: input, shape index: {}]   ;;  %s3985_s14 = inlined_call_operand.vmem [shape: f32[2,1,128], index: 14, kind: input, shape index: {}]   ;;  %s3986_s15 = inlined_call_operand.vmem [shape: bf16[2,128,32], index: 15, kind: input, shape index: {}]   ;;  %s3987_s16 = inlined_call_operand.vmem [shape: f32[2,1,32], index: 16, kind: input, shape index: {}]   ;;  %s3988_s17 = inlined_call_operand.hbm [shape: f32[2,1,32], index: 17, kind: output, shape index: {}]  }
   0x1   :  { %4005 = sst [smem:[#allocation21_spill]] %s3971_s0 }
   0x2   :  { %4006 = sst [smem:[#allocation22_spill]] %s3972_s1 }
   0x3   :  { %4007 = sst [smem:[#allocation23_spill]] %s3974_s3 }
   0x4   :  { %4008 = sst [smem:[#allocation24_spill]] %s3975_s4 }
   0x5   :  { %4009 = sst [smem:[#allocation25_spill]] %s3976_s5 }
   0x6   :  { %4010 = sst [smem:[#allocation26_spill]] %s3977_s6 }
   0x7   :  { %4011 = sst [smem:[#allocation27_spill]] %s3978_s7 }
   0x8   :  { %4012 = sst [smem:[#allocation28_spill]] %s3979_s8 }
   0x9   :  { %4013 = sst [smem:[#allocation29_spill]] %s3980_s9 }
   0xa   :  { %4014 = sst [smem:[#allocation30_spill]] %s3982_s11 }
   0xb   :  { %4015 = sst [smem:[#allocation31_spill]] %s3985_s14 }
   0xc   :  { %4016 = sst [smem:[#allocation32_spill]] %s3986_s15 }
   0xd   :  { %4017 = sst [smem:[#allocation33_spill]] %s3987_s16 }
   0xe   :  { %4018 = sst [smem:[#allocation34_spill]] %s3988_s17 }
   0xf   :  { %22 = vsyncpa [#allocation4], 0 }
  0x10   :  { %24 = vsyncpa [#allocation4 + $0x1], 0  ;;  %s3498_s24 = smov 0   ;;  %s3500_s25 = smov 0  }
  0x11   :  { %s3502_s26 = smov 0   ;;  %s3504_s27 = smov 0  }
  0x12   :  { %s3506_s28 = smov 0   ;;  %s3508_s29 = smov 0  }
  0x13   :  { %s3510_s0 = smov 0   ;;  %s3512_s30 = smov 0  }
  0x14 LB: > { %4019 = sst [smem:[#allocation6_spill]] %s3375_s24  ;;  %s2758_s18 = sadd.s32 4294967295, %s3403_s30   ;;  %s3403_s30 = sphi %s3512_s30, %s30_s30   ;;  %s3399_s0 = sphi %s3510_s0, %s4076_s0   ;;  %s3395_s29 = sphi %s3508_s29, %s4075_s29   ;;  %s3391_s28 = sphi %s3506_s28, %s4074_s28   ;;  %s3387_s27 = sphi %s3504_s27, %s4073_s27   ;;  %s3383_s26 = sphi %s3502_s26, %s4072_s26   ;;  %s3379_s25 = sphi %s3500_s25, %s4078_s25   ;;  %s3375_s24 = sphi %s3498_s24, %s4077_s24  }
  0x15   : > { %4020 = sst [smem:[#allocation7_spill]] %s3383_s26  ;;  %s2759_s19 = sadd.s32 4294967294, %s3403_s30  }
  0x16   : > { %4021 = sst [smem:[#allocation8_spill]] %s3387_s27  ;;  %s39_s1 = sadd.s32 1, %s3395_s29 }
  0x17   : > { %4022 = sst [smem:[#allocation9_spill]] %s3391_s28  ;;  %p40_p0 = scmp.ge.s32.totalorder %s39_s1, 2 }
  0x18   : > { %4023 = sst [smem:[#allocation10_spill]] %s3395_s29  ;;  %s42_s20 = sadd.s32 1, %s3399_s0 }
  0x19   : > { %4024 = sst [smem:[#allocation11_spill]] %s3399_s0  ;;  %p501_p1 = scmp.ne.s32.totalorder %s3383_s26, %s3379_s25 }
  0x1a   : > { %4025 = sst [smem:[#allocation12_spill]] %s3403_s30  ;;  %p502_p2 = scmp.eq.s32.totalorder %s2758_s18, 3 }
  0x1b   : > { %s4080_s1 = smov (%p40_p0, %s39_s1), 0  ;;  %s4082_s20 = smov (!%p40_p0, %s42_s20), %s3399_s0 }
  0x1c   : > { %4026 = sst [smem:[#allocation13_spill]] %s4080_s1  ;;  %p3547_p3 = por %p502_p2, %p501_p1 }
  0x1d   : > { %p507_p4 = scmp.ne.s32.totalorder %s3379_s25, %s3375_s24  ;;  %p44_p5 = scmp.ge.s32.totalorder %s4082_s20, 2 }
  0x1e   : > { %s4027_s21 = scalar_select %p3547_p3, 1, 0 }
  0x1f   : > { %p508_p6 = scmp.eq.s32.totalorder %s2759_s19, 3  ;;  %p2762_p7 = scmp.ge.s32.totalorder %s3403_s30, 1 }
  0x20   : > { %4028 = sst [smem:[#allocation14_spill]] %s4027_s21  ;;  %p644_p8 = scmp.lt.s32.totalorder %s3403_s30, 5 }
  0x21   : > { %s4084_s20 = smov (%p44_p5, %s4082_s20), 0  ;;  %p3557_p9 = por %p508_p6, %p507_p4 }
  0x22   : > { %4029 = sst [smem:[#allocation15_spill]] %s4084_s20  ;;  %p645_p10 = pnand %p2762_p7, %p644_p8 }
  0x23   : > { %s4030_s22 = scalar_select %p3557_p9, 1, 0 }
  0x24   : > { %s488_s23 = ssub.s32 %s3399_s0, %s4084_s20  ;;  %s491_s18 = sadd.s32 1, %s3383_s26 }
  0x25   : > { %4031 = sst [smem:[#allocation16_spill]] %s4030_s22  ;;  %p489_p11 = scmp.eq.s32.totalorder %s488_s23, 0 }
  0x26   : > { %648 = sbr.rel (%p645_p10) target bundleno = 4803 (0x12c3), region = 88 }
  0x27   : > { %s3565_s1 = scalar_select %p489_p11, %s3383_s26, %s491_s18  }
  0x29   : > { %4032 = sst [smem:[#allocation17_spill]] %s3565_s1 }
  0x2b   : > { %p757_p12 = scmp.lt.s32.totalorder %s3391_s28, 1  ;;  %p761_p13 = scmp.lt.s32.totalorder %s3387_s27, 1 }
  0x2c   : > { %s4033_s0 = sld [smem:[#allocation21_spill]] }
  0x2d   : > { %s758_s29 = scalar_select %p757_p12, %s3391_s28, 1 }
  0x2e   : > { %s3572_s24 = scalar_select %p761_p13, %s3387_s27, 1 }
  0x2f   : > { %s2763_s23 = sshll.u32 %s758_s29, 3  ;;  %s4035_s3 = sld [smem:[#allocation23_spill]] }
  0x30   : > { %s2910_s27 = sshll.u32 %s3572_s24, 6  ;;  %s4036_s4 = sld [smem:[#allocation24_spill]] }
  0x31   : > { %s4037_s5 = sld [smem:[#allocation25_spill]]  ;;  %s2770_s17 = sshll.u32 %s3572_s24, 2 }
  0x32   : > { %s760_s1 = scalar_lea.vmem %s4033_s0, %s2763_s23  ;;  %s4038_s6 = sld [smem:[#allocation26_spill]] }
  0x33   : > { %s4040_s7 = sld [smem:[#allocation27_spill]] }
  0x34   : > { %s4041_s8 = sld [smem:[#allocation28_spill]] }
  0x35   : > { %s3589_s29 = scalar_lea.vmem %s4035_s3, %s2910_s27  ;;  %s2913_s3 = sshll.u32 %s3572_s24, 4 }
  0x36   : > { %s3594_s0 = scalar_lea.vmem %s4036_s4, %s2910_s27  ;;  %s4043_s9 = sld [smem:[#allocation29_spill]] }
  0x37   : > { %s3599_s19 = scalar_lea.vmem %s4037_s5, %s2910_s27  ;;  %s4047_s21 = sld [smem:[#allocation32_spill]] }
  0x38   : > { %s3605_s18 = scalar_lea.vmem %s4038_s6, %s2770_s17  ;;  %s4048_s15 = sld [smem:[#allocation33_spill]] }
  0x39   : > { %4039 = sst [smem:[#allocation18_spill]] %s3605_s18  ;;  %s3610_s28 = scalar_lea.vmem %s4040_s7, %s2770_s17 }
  0x3a   : > { %s3615_s30 = scalar_lea.vmem %s4041_s8, %s2770_s17  ;;  %s3638_s8 = scalar_lea.vmem %s3984_s13, %s2913_s3 }
  0x3b   : > { %4042 = sst [smem:[#allocation19_spill]] %s3615_s30  ;;  %s4049_s7 = sand.u32 1, %s3379_s25  }
  0x3c   : > { %s3621_s4 = scalar_lea.vmem %s4043_s9, %s2913_s3  ;;  %s4046_s9 = sld [smem:[#allocation31_spill]] }
  0x3d   : > { %4044 = sst [smem:[#allocation20_spill]] %s3621_s4  ;;  %s3647_s23 = scalar_lea.vmem %s4047_s21, %s2910_s27 }
  0x3e   : > { %s823_s11 = scalar_lea.vmem %s4048_s15, %s3572_s24  ;;  %s3655_s16 = scalar_lea.vmem [#allocation3], %s4049_s7 }
  0x3f   : > { %s4050_s14 = sld [smem:[#allocation8_spill]] }
  0x42   : > { %s815_s4 = scalar_lea.vmem %s4046_s9, %s3572_s24 }
  0x45   : > { %p2779_p0 = scmp.ne.s32.totalorder %s4050_s14, 0 }
  0x47   : > { %828 = sbr.rel (%p2779_p0) target bundleno = 78 (0x4e), region = 92 }
  0x4c   : > { %v829_v0 = vld [vmem:[%s760_s1] sm:$0xff]  ;;  %vm830_vm0 = vcmask 261120  }
  0x4d   : > { %831 = vst.msk [vmem:[#allocation2] sm:$0xff] %vm830_vm0, %v829_v0 }
  0x4e PF: > { %vm833_vm1 = vcmask 261120   ;;  %v3257_v8 = vld [vmem:[%s3589_s29 + $0x8] sm:$0xff]   ;;  %v3405_v9 = vmov 0.0   ;;  %v3258_v10 = vld [vmem:[%s3589_s29] sm:$0xff]   ;;  %vm3406_vm2 = vmmov 0   ;;  %s4051_s27 = sld [smem:[#allocation22_spill]]  ;;  %s4053_s14 = scalar_lea.vmem %s3973_s2, %s3572_s24 }
  0x4f   : > { %2988 = vmatprep.subr.bf16.mxu0 %v3405_v9  ;;  %3012 = vmatprep.subr.bf16.mxu1 %v3405_v9  ;;  %v2781_v17 = vld [vmem:[%s4053_s14] ss:$0 sm:$0xff]  ;;  %v3259_v20 = vld [vmem:[%s3594_s0 + $0x8] sm:$0xff]   ;;  %s4054_s17 = sld [smem:[#allocation18_spill]]  ;;  %vm1061_vm3 = vcmask 64512   ;;  %vm1123_vm4 = vcmask 1043456   ;;  %s4060_s18 = scalar_lea.vmem %s3983_s12, %s3572_s24 }
  0x50   : > { %2989 = vmatpush3.bf16.msra.mxu0 %v3257_v8  ;;  %2992 = vmatprep.mubr.msk.bf16.mxu0 %vm3406_vm2, %v3405_v9  ;;  %v3260_v22 = vld [vmem:[%s3594_s0] sm:$0xff]   ;;  %v3261_v23 = vld [vmem:[%s3599_s19 + $0x8] sm:$0xff]   ;;  %s4055_s20 = sld [smem:[#allocation19_spill]]  ;;  %v3263_v44 = vld [vmem:[%s3589_s29 + $0x18] sm:$0xff]  }
  0x51   : > { %2990 = vmatprep.subr.bf16.mxu0 %v3405_v9  ;;  %3014 = vmatprep.mubr.msk.bf16.mxu1 %vm3406_vm2, %v3405_v9  ;;  %v3262_v24 = vld [vmem:[%s3599_s19] sm:$0xff]   ;;  %v3264_v50 = vld [vmem:[%s3589_s29 + $0x10] sm:$0xff]   ;;  %v3265_v51 = vld [vmem:[%s3599_s19 + $0x18] sm:$0xff]   ;;  %s4056_s26 = sld [smem:[#allocation20_spill]] }
  0x52   : > { %v2786_v29 = vld [vmem:[%s3610_s28] ss:$0 sm:$0xff]  ;;  %v3266_v52 = vld [vmem:[%s3599_s19 + $0x10] sm:$0xff]   ;;  %s4058_s22 = sld [smem:[#allocation30_spill]] }
  0x54   : > { %v3658_v1 = vld [vmem:[#allocation2] sm:$0xff]  ;;  %2991 = vmatpush3.bf16.msra.mxu0 %v3258_v10  ;;  %s4052_s30 = scalar_lea.vmem %s4051_s27, %s3572_s24 }
  0x55   : > { %v834_v2 = vsel %vm833_vm1, %v3658_v1, 0.0  ;;  %2996 = vmatprep.subr.bf16.mxu0 %v3405_v9  ;;  %v2780_v15 = vld [vmem:[%s4052_s30] ss:$0 sm:$0xff] }
  0x56   : > { %835 = vadd.xlane.f32.xlu0 %v834_v2  ;;  %v2782_v30 = vld [vmem:[%s4054_s17] ss:$0 sm:$0xff]  ;;  %v2819_v62 = vld [vmem:[%s4055_s20 + $0x1] ss:$0 sm:$0xff] }
  0x57   : > { %v2790_v39 = vld [vmem:[%s4055_s20] ss:$0 sm:$0xff] }
  0x58   : > { %s4059_s5 = scalar_lea.vmem %s4058_s22, %s3572_s24 }
  0xdf   : > { %v836_v3 = vpop.xlane.xlu0 %835 }
  0xe0   : > { %v838_v4 = vmul.f32 0.03125, %v836_v3 }
  0xe2   : > { %v839_v5 = vsub.f32 %v3658_v1, %v838_v4 }
  0xe4   : > { %v840_v6 = vmul.f32 %v839_v5, %v839_v5 }
  0xe6   : > { %v841_v7 = vsel %vm833_vm1, %v840_v6, 0.0 }
  0xe7   : > { %842 = vadd.xlane.f32.xlu0 %v841_v7 }
 0x170   : > { %v843_v11 = vpop.xlane.xlu0 %842 }
 0x171   : > { %v844_v12 = vmul.f32 0.03125, %v843_v11 }
 0x173   : > { %v845_v13 = vadd.f32 1e-05, %v844_v12 }
 0x175   : > { %3291 = vrsqrt.f32 %v845_v13 }
 0x182   : > { %v3292_v14 = vpop.eup %3291 }
 0x183   : > { %v847_v16 = vmul.f32 %v3292_v14, %v839_v5 }
 0x185   : > { %v855_v18 = vmul.f32 %v2780_v15, %v847_v16  ;;  %v3267_v16 = vld [vmem:[%s3594_s0 + $0x18] sm:$0xff]  }
 0x187   : > { %v863_v19 = vadd.f32 %v2781_v17, %v855_v18  ;;  %v3268_v18 = vld [vmem:[%s3594_s0 + $0x10] sm:$0xff]  }
 0x189   : > { %v3685_v21 = vpack.c.bf16 %v863_v19, %v863_v19 }
 0x18b   : > { %2993 = vmatmul.mubr.msk.bf16.vlgmr.msra.gmra.mxu0 %vm833_vm1, %v3685_v21 }
 0x18c   : > { %2997 = vmatpush3.bf16.msra.mxu0 %v3259_v20  ;;  %3000 = vmatprep.mubr.msk.bf16.mxu0 %vm3406_vm2, %v3405_v9 }
 0x18d   : > { %2998 = vmatprep.subr.bf16.mxu0 %v3405_v9 }
 0x190   : > { %2999 = vmatpush3.bf16.msra.mxu0 %v3260_v22 }
 0x191   : > { %3004 = vmatprep.subr.bf16.mxu0 %v3405_v9 }
 0x193   : > { %3001 = vmatmul.mubr.msk.bf16.vlgmr.msra.gmra.mxu0 %vm833_vm1, %v3685_v21 }
 0x194   : > { %3005 = vmatpush3.bf16.msra.mxu0 %v3261_v23  ;;  %3008 = vmatprep.mubr.msk.bf16.mxu0 %vm3406_vm2, %v3405_v9 }
 0x195   : > { %3006 = vmatprep.subr.bf16.mxu0 %v3405_v9 }
 0x198   : > { %3007 = vmatpush3.bf16.msra.mxu0 %v3262_v24  ;;  %v2814_v24 = vld [vmem:[%s3610_s28 + $0x1] ss:$0 sm:$0xff] }
 0x199   : > { %3018 = vmatprep.subr.bf16.mxu0 %v3405_v9 }
 0x19b   : > { %3009 = vmatmul.mubr.msk.bf16.vlgmr.msra.gmra.mxu0 %vm833_vm1, %v3685_v21 }
 0x19c   : > { %3020 = vmatprep.mubr.msk.bf16.mxu0 %vm3406_vm2, %v3405_v9 }
 0x24b   : > { %v933_v25 = vpop.f32.mrf.mxu0 }
 0x24c   : > { %v934_v34 = vadd.f32 %v2782_v30, %v933_v25  ;;  %v2809_v25 = vld [vmem:[%s4054_s17 + $0x1] ss:$0 sm:$0xff] }
 0x24d   : > { %v2994_v26 = vpop.f32.mrf.mxu0 }
 0x24e   : > { %v1057_v40 = vmul.f32 0.35355338, %v934_v34 }
 0x24f   : > { %v936_v27 = vpop.f32.mrf.mxu0 }
 0x250   : > { %v1058_v45 = vpack.c.bf16 %v1057_v40, %v1057_v40 }
 0x251   : > { %v2995_v28 = vpop.f32.mrf.mxu0 }
 0x253   : > { %v992_v31 = vpop.f32.mrf.mxu0 }
 0x254   : > { %v993_v32 = vadd.f32 %v2786_v29, %v992_v31 }
 0x255   : > { %v3002_v33 = vpop.f32.mrf.mxu0 }
 0x256   : > { %v1059_v35 = vpack.c.bf16 %v993_v32, %v993_v32 }
 0x257   : > { %v995_v36 = vpop.f32.mrf.mxu0 }
 0x258   : > { %v1066_v37 = vsel %vm1061_vm3, %v1059_v35, 0 }
 0x259   : > { %v3003_v38 = vpop.f32.mrf.mxu0  ;;  %3013 = vmatpush3.bf16.xpose.msra.mxu1 %v1066_v37 }
 0x25a   : > { %3024 = vmatprep.subr.bf16.mxu1 %v3405_v9 }
 0x25b   : > { %v1051_v41 = vpop.f32.mrf.mxu0 }
 0x25c   : > { %v1052_v42 = vadd.f32 %v2790_v39, %v1051_v41 }
 0x25d   : > { %v3010_v43 = vpop.f32.mrf.mxu0 }
 0x25e   : > { %v1060_v46 = vpack.c.bf16 %v1052_v42, %v1052_v42 }
 0x25f   : > { %v1054_v47 = vpop.f32.mrf.mxu0 }
 0x260   : > { %v1125_v48 = vsel %vm1123_vm4, %v1060_v46, 0  ;;  %3015 = vmatmul.mubr.msk.bf16.vlgmr.msra.gmra.mxu1 %vm1061_vm3, %v1058_v45  ;;  %v2825_v46 = vld [vmem:[%s4056_s26 + $0x4] sm:$0xf] }
 0x261   : > { %v3011_v49 = vpop.f32.mrf.mxu0  ;;  %3019 = vmatpush3.bf16.msra.mxu0 %v1125_v48  ;;  %3025 = vmatpush3.bf16.msra.mxu1 %v3263_v44  ;;  %v1479_v47 = vsel %vm1123_vm4, %v2825_v46, 0 }
 0x262   : > { %3026 = vmatprep.subr.bf16.mxu1 %v3405_v9  ;;  %3028 = vmatprep.mubr.msk.bf16.mxu1 %vm3406_vm2, %v3405_v9 }
 0x263   : > { %3032 = vmatprep.subr.bf16.mxu0 %v3405_v9 }
 0x265   : > { %3027 = vmatpush3.bf16.msra.mxu1 %v3264_v50  ;;  %v1168_v50 = vld [vmem:[%s4056_s26] sm:$0xf] }
 0x266   : > { %3040 = vmatprep.subr.bf16.mxu1 %v3405_v9 }
 0x268   : > { %3029 = vmatmul.mubr.msk.bf16.vlgmr.msra.gmra.mxu1 %vm833_vm1, %v3685_v21 }
 0x269   : > { %3041 = vmatpush3.bf16.msra.mxu1 %v3265_v51  ;;  %3044 = vmatprep.mubr.msk.bf16.mxu1 %vm3406_vm2, %v3405_v9 }
 0x26a   : > { %3042 = vmatprep.subr.bf16.mxu1 %v3405_v9 }
 0x26d   : > { %3043 = vmatpush3.bf16.msra.mxu1 %v3266_v52 }
 0x26e   : > { %3054 = vmatprep.subr.bf16.mxu1 %v3405_v9 }
 0x270   : > { %3045 = vmatmul.mubr.msk.bf16.vlgmr.msra.gmra.mxu1 %vm833_vm1, %v3685_v21 }
 0x271   : > { %3056 = vmatprep.mubr.msk.bf16.mxu1 %vm3406_vm2, %v3405_v9 }
 0x320   : > { %v1102_v53 = vpop.f32.mrf.mxu1 }
 0x321   : > { %v1108_v54 = vsel %vm1061_vm3, %v1102_v53, -inf }
 0x322   : > { %1109 = vmax.xlane.f32.xlu1 %v1108_v54  ;;  %v3016_v55 = vpop.f32.mrf.mxu1  ;;  %v3269_v54 = vld [vmem:[%s3594_s0 + $0x28] sm:$0xff]  }
 0x324   : > { %v1105_v56 = vpop.f32.mrf.mxu1 }
 0x325   : > { %v3270_v56 = vld [vmem:[%s3594_s0 + $0x20] sm:$0xff]  }
 0x326   : > { %v3017_v57 = vpop.f32.mrf.mxu1 }
 0x328   : > { %v1238_v58 = vpop.f32.mrf.mxu1 }
 0x329   : > { %v1239_v29 = vadd.f32 %v2809_v25, %v1238_v58  ;;  %v3271_v58 = vld [vmem:[%s3589_s29 + $0x28] sm:$0xff]  }
 0x32a   : > { %v3030_v59 = vpop.f32.mrf.mxu1 }
 0x32b   : > { %v1364_v34 = vmul.f32 0.35355338, %v1239_v29  ;;  %v2851_v29 = vld [vmem:[%s4055_s20 + $0x2] ss:$0 sm:$0xff] }
 0x32c   : > { %v1241_v60 = vpop.f32.mrf.mxu1 }
 0x32d   : > { %v1365_v35 = vpack.c.bf16 %v1364_v34, %v1364_v34 }
 0x32e   : > { %v3031_v61 = vpop.f32.mrf.mxu1 }
 0x330   : > { %v1358_v63 = vpop.f32.mrf.mxu1 }
 0x331   : > { %v1359_v0 = vadd.f32 %v2819_v62, %v1358_v63  ;;  %v3272_v62 = vld [vmem:[%s3589_s29 + $0x20] sm:$0xff]  }
 0x332   : > { %v3046_v2 = vpop.f32.mrf.mxu1 }
 0x333   : > { %v1367_v3 = vpack.c.bf16 %v1359_v0, %v1359_v0  ;;  %v3273_v2 = vld [vmem:[%s3599_s19 + $0x28] sm:$0xff]  }
 0x334   : > { %v1361_v4 = vpop.f32.mrf.mxu1 }
 0x335   : > { %v1430_v5 = vsel %vm1123_vm4, %v1367_v3, 0 }
 0x336   : > { %v3047_v6 = vpop.f32.mrf.mxu1  ;;  %3055 = vmatpush3.bf16.msra.mxu1 %v1430_v5  ;;  %v3274_v5 = vld [vmem:[%s3599_s19 + $0x20] sm:$0xff]  }
 0x337   : > { %3066 = vmatprep.subr.bf16.mxu1 %v3405_v9 }
 0x3ab   : > { %v1110_v7 = vpop.xlane.xlu1 %1109 }
 0x3ac   : > { %v1111_v8 = vsub.f32 %v1102_v53, %v1110_v7  ;;  %v1525_v53 = vsel %vm1123_vm4, %v1168_v50, 0  ;;  %v2846_v7 = vld [vmem:[%s3610_s28 + $0x2] ss:$0 sm:$0xff] }
 0x3ae   : > { %v1112_v10 = vmul.f32 1.442695, %v1111_v8 }
 0x3b0   : > { %3293 = vpow2.f32 %v1112_v10 }
 0x3bd   : > { %v3294_v11 = vpop.eup %3293 }
 0x3be   : > { %v1114_v12 = vsel %vm1061_vm3, %v3294_v11, 0.0 }
 0x3bf   : > { %1115 = vadd.xlane.f32.xlu1 %v1114_v12 }
 0x448   : > { %v1116_v13 = vpop.xlane.xlu1 %1115 }
 0x449   : > { %3295 = vrcp.f32 %v1116_v13 }
 0x456   : > { %v3296_v14 = vpop.eup %3295 }
 0x457   : > { %v1118_v15 = vmul.f32 %v3296_v14, %v3294_v11 }
 0x459   : > { %v1119_v17 = vpack.c.bf16 %v1118_v15, %v1118_v15 }
 0x45b   : > { %3021 = vmatmul.mubr.msk.bf16.vlgmr.msra.gmra.mxu0 %vm1061_vm3, %v1119_v17 }
 0x45c   : > { %3033 = vmatpush3.bf16.msra.mxu0 %v3267_v16  ;;  %3036 = vmatprep.mubr.msk.bf16.mxu0 %vm3406_vm2, %v3405_v9 }
 0x45d   : > { %3034 = vmatprep.subr.bf16.mxu0 %v3405_v9 }
 0x460   : > { %3035 = vmatpush3.bf16.msra.mxu0 %v3268_v18 }
 0x461   : > { %3048 = vmatprep.subr.bf16.mxu0 %v3405_v9 }
 0x463   : > { %3037 = vmatmul.mubr.msk.bf16.vlgmr.msra.gmra.mxu0 %vm833_vm1, %v3685_v21 }
 0x464   : > { %3050 = vmatprep.mubr.msk.bf16.mxu0 %vm3406_vm2, %v3405_v9 }
 0x51b   : > { %v1161_v19 = vpop.f32.mrf.mxu0 }
 0x51c   : > { %v1167_v55 = vpack.c.bf16 %v1161_v19, %v1161_v19 }
 0x51d   : > { %v3022_v20 = vpop.f32.mrf.mxu0 }
 0x51e   : > { %v2841_v20 = vld [vmem:[%s4054_s17 + $0x2] ss:$0 sm:$0xff] }
 0x51f   : > { %v1164_v22 = vpop.f32.mrf.mxu0 }
 0x521   : > { %v3023_v23 = vpop.f32.mrf.mxu0 }
 0x523   : > { %v1298_v26 = vpop.f32.mrf.mxu0 }
 0x524   : > { %v1299_v27 = vadd.f32 %v2814_v24, %v1298_v26 }
 0x525   : > { %v3038_v28 = vpop.f32.mrf.mxu0 }
 0x526   : > { %v1366_v30 = vpack.c.bf16 %v1299_v27, %v1299_v27 }
 0x527   : > { %v1301_v31 = vpop.f32.mrf.mxu0 }
 0x528   : > { %v1372_v32 = vsel %vm1061_vm3, %v1366_v30, 0 }
 0x529   : > { %v3039_v33 = vpop.f32.mrf.mxu0  ;;  %3049 = vmatpush3.bf16.xpose.msra.mxu0 %v1372_v32 }
 0x52a   : > { %3060 = vmatprep.subr.bf16.mxu0 %v3405_v9 }
 0x530   : > { %3051 = vmatmul.mubr.msk.bf16.vlgmr.msra.gmra.mxu0 %vm1061_vm3, %v1365_v35 }
 0x531   : > { %3062 = vmatprep.mubr.msk.bf16.mxu0 %vm3406_vm2, %v3405_v9  ;;  %3061 = vmatpush3.bf16.msra.mxu0 %v1479_v47  ;;  %v2857_v47 = vld [vmem:[%s4056_s26 + $0x8] sm:$0xf] }
 0x532   : > { %3072 = vmatprep.subr.bf16.mxu0 %v3405_v9 }
 0x5f0   : > { %v1408_v36 = vpop.f32.mrf.mxu0 }
 0x5f1   : > { %v1414_v37 = vsel %vm1061_vm3, %v1408_v36, -inf }
 0x5f2   : > { %1415 = vmax.xlane.f32.xlu0 %v1414_v37  ;;  %v3052_v38 = vpop.f32.mrf.mxu0 }
 0x5f4   : > { %v1411_v39 = vpop.f32.mrf.mxu0 }
 0x5f6   : > { %v3053_v40 = vpop.f32.mrf.mxu0 }
 0x67b   : > { %v1416_v41 = vpop.xlane.xlu0 %1415 }
 0x67c   : > { %v1417_v42 = vsub.f32 %v1408_v36, %v1416_v41 }
 0x67e   : > { %v1418_v43 = vmul.f32 1.442695, %v1417_v42 }
 0x680   : > { %3297 = vpow2.f32 %v1418_v43 }
 0x68d   : > { %v3298_v44 = vpop.eup %3297 }
 0x68e   : > { %v1420_v45 = vsel %vm1061_vm3, %v3298_v44, 0.0 }
 0x68f   : > { %1421 = vadd.xlane.f32.xlu1 %v1420_v45 }
 0x718   : > { %v1422_v48 = vpop.xlane.xlu1 %1421 }
 0x719   : > { %3299 = vrcp.f32 %v1422_v48  ;;  %v1877_v48 = vsel %vm1123_vm4, %v2857_v47, 0 }
 0x726   : > { %v3300_v49 = vpop.eup %3299 }
 0x727   : > { %v1424_v51 = vmul.f32 %v3300_v49, %v3298_v44 }
 0x729   : > { %v1425_v52 = vpack.c.bf16 %v1424_v51, %v1424_v51 }
 0x72b   : > { %3057 = vmatmul.mubr.msk.bf16.vlgmr.msra.gmra.mxu1 %vm1061_vm3, %v1425_v52  ;;  %v3275_v52 = vld [vmem:[%s3589_s29 + $0x38] sm:$0xff]  }
 0x72c   : > { %3067 = vmatpush3.bf16.msra.mxu1 %v1525_v53  ;;  %3068 = vmatprep.mubr.msk.bf16.mxu1 %vm3406_vm2, %v3405_v9 }
 0x72d   : > { %3080 = vmatprep.subr.bf16.mxu1 %v3405_v9 }
 0x733   : > { %3069 = vmatmul.mubr.msk.bf16.vlgmr.msra.gmra.mxu1 %vm1061_vm3, %v1167_v55  ;;  %v3277_v55 = vld [vmem:[%s3599_s19 + $0x38] sm:$0xff]  }
 0x734   : > { %3081 = vmatpush3.bf16.msra.mxu1 %v3269_v54  ;;  %3084 = vmatprep.mubr.msk.bf16.mxu1 %vm3406_vm2, %v3405_v9  ;;  %v3276_v54 = vld [vmem:[%s3589_s29 + $0x30] sm:$0xff]  }
 0x735   : > { %3082 = vmatprep.subr.bf16.mxu1 %v3405_v9 }
 0x738   : > { %3083 = vmatpush3.bf16.msra.mxu1 %v3270_v56  ;;  %v3278_v56 = vld [vmem:[%s3599_s19 + $0x30] sm:$0xff]  }
 0x739   : > { %3096 = vmatprep.subr.bf16.mxu1 %v3405_v9 }
 0x73b   : > { %3085 = vmatmul.mubr.msk.bf16.vlgmr.msra.gmra.mxu1 %vm833_vm1, %v3685_v21 }
 0x73c   : > { %3098 = vmatprep.mubr.msk.bf16.mxu1 %vm3406_vm2, %v3405_v9 }
 0x7eb   : > { %v1466_v57 = vpop.f32.mrf.mxu1 }
 0x7ec   : > { %v1472_v59 = vpack.c.bf16 %v1466_v57, %v1466_v57 }
 0x7ed   : > { %v3058_v60 = vpop.f32.mrf.mxu1 }
 0x7ee   : > { %3063 = vmatmul.mubr.msk.bf16.vlgmr.msra.gmra.mxu0 %vm1061_vm3, %v1472_v59 }
 0x7ef   : > { %v1469_v61 = vpop.f32.mrf.mxu1  ;;  %3073 = vmatpush3.bf16.msra.mxu0 %v3271_v58  ;;  %3076 = vmatprep.mubr.msk.bf16.mxu0 %vm3406_vm2, %v3405_v9  ;;  %v3279_v58 = vld [vmem:[%s3594_s0 + $0x38] sm:$0xff]  }
 0x7f0   : > { %3074 = vmatprep.subr.bf16.mxu0 %v3405_v9 }
 0x7f1   : > { %v3059_v63 = vpop.f32.mrf.mxu1 }
 0x7f3   : > { %v3783_v0 = vpop.f32.mrf.mxu1  ;;  %3075 = vmatpush3.bf16.msra.mxu0 %v3272_v62  ;;  %v3280_v62 = vld [vmem:[%s3594_s0 + $0x30] sm:$0xff]   ;;  %s4057_s0 = scalar_lea.vmem %s3981_s10, %s3572_s24 }
 0x7f4   : > { %3088 = vmatprep.subr.bf16.mxu0 %v3405_v9 }
 0x7f5   : > { %v3070_v3 = vpop.f32.mrf.mxu1 }
 0x7f6   : > { %3077 = vmatmul.mubr.msk.bf16.vlgmr.msra.gmra.mxu0 %vm833_vm1, %v3685_v21 }
 0x7f7   : > { %v1564_v4 = vpop.f32.mrf.mxu1  ;;  %3089 = vmatpush3.bf16.msra.mxu0 %v3273_v2  ;;  %3092 = vmatprep.mubr.msk.bf16.mxu0 %vm3406_vm2, %v3405_v9 }
 0x7f8   : > { %3090 = vmatprep.subr.bf16.mxu0 %v3405_v9 }
 0x7f9   : > { %v3071_v6 = vpop.f32.mrf.mxu1 }
 0x7fa   : > { %v2882_v6 = vld [vmem:[%s4055_s20 + $0x3] ss:$0 sm:$0xff] }
 0x7fb   : > { %v1696_v8 = vpop.f32.mrf.mxu1  ;;  %3091 = vmatpush3.bf16.msra.mxu0 %v3274_v5 }
 0x7fc   : > { %v1697_v10 = vadd.f32 %v2846_v7, %v1696_v8  ;;  %3102 = vmatprep.subr.bf16.mxu0 %v3405_v9 }
 0x7fd   : > { %v3086_v11 = vpop.f32.mrf.mxu1 }
 0x7fe   : > { %v1764_v12 = vpack.c.bf16 %v1697_v10, %v1697_v10  ;;  %3093 = vmatmul.mubr.msk.bf16.vlgmr.msra.gmra.mxu0 %vm833_vm1, %v3685_v21 }
 0x7ff   : > { %v1699_v13 = vpop.f32.mrf.mxu1  ;;  %3104 = vmatprep.mubr.msk.bf16.mxu0 %vm3406_vm2, %v3405_v9 }
 0x800   : > { %v1770_v14 = vsel %vm1061_vm3, %v1764_v12, 0 }
 0x801   : > { %v3087_v15 = vpop.f32.mrf.mxu1  ;;  %3097 = vmatpush3.bf16.xpose.msra.mxu1 %v1770_v14 }
 0x802   : > { %3108 = vmatprep.subr.bf16.mxu1 %v3405_v9 }
 0x8ae   : > { %v3801_v16 = vpop.f32.mrf.mxu0 }
 0x8b0   : > { %v3064_v17 = vpop.f32.mrf.mxu0 }
 0x8b2   : > { %v1518_v18 = vpop.f32.mrf.mxu0 }
 0x8b4   : > { %v3065_v19 = vpop.f32.mrf.mxu0 }
 0x8b6   : > { %v1636_v22 = vpop.f32.mrf.mxu0 }
 0x8b7   : > { %v1637_v23 = vadd.f32 %v2841_v20, %v1636_v22  ;;  %v2877_v22 = vld [vmem:[%s3610_s28 + $0x3] ss:$0 sm:$0xff] }
 0x8b8   : > { %v3078_v24 = vpop.f32.mrf.mxu0 }
 0x8b9   : > { %v1762_v25 = vmul.f32 0.35355338, %v1637_v23  ;;  %v2872_v23 = vld [vmem:[%s4054_s17 + $0x3] ss:$0 sm:$0xff] }
 0x8ba   : > { %v1639_v26 = vpop.f32.mrf.mxu0 }
 0x8bb   : > { %v1763_v27 = vpack.c.bf16 %v1762_v25, %v1762_v25 }
 0x8bc   : > { %v3079_v28 = vpop.f32.mrf.mxu0 }
 0x8bd   : > { %3099 = vmatmul.mubr.msk.bf16.vlgmr.msra.gmra.mxu1 %vm1061_vm3, %v1763_v27 }
 0x8be   : > { %v1756_v30 = vpop.f32.mrf.mxu0  ;;  %3110 = vmatprep.mubr.msk.bf16.mxu1 %vm3406_vm2, %v3405_v9  ;;  %3109 = vmatpush3.bf16.msra.mxu1 %v1877_v48 }
 0x8bf   : > { %v1757_v31 = vadd.f32 %v2851_v29, %v1756_v30  ;;  %3122 = vmatprep.subr.bf16.mxu1 %v3405_v9 }
 0x8c0   : > { %v3094_v32 = vpop.f32.mrf.mxu0 }
 0x8c1   : > { %v1765_v33 = vpack.c.bf16 %v1757_v31, %v1757_v31 }
 0x8c2   : > { %v1759_v34 = vpop.f32.mrf.mxu0 }
 0x8c3   : > { %v1828_v35 = vsel %vm1123_vm4, %v1765_v33, 0 }
 0x8c4   : > { %v3095_v36 = vpop.f32.mrf.mxu0  ;;  %3103 = vmatpush3.bf16.msra.mxu0 %v1828_v35 }
 0x8c5   : > { %3114 = vmatprep.subr.bf16.mxu0 %v3405_v9 }
 0x97d   : > { %v1806_v37 = vpop.f32.mrf.mxu1 }
 0x97e   : > { %v1812_v38 = vsel %vm1061_vm3, %v1806_v37, -inf }
 0x97f   : > { %1813 = vmax.xlane.f32.xlu0 %v1812_v38  ;;  %v3100_v39 = vpop.f32.mrf.mxu1 }
 0x981   : > { %v1809_v40 = vpop.f32.mrf.mxu1 }
 0x983   : > { %v3101_v41 = vpop.f32.mrf.mxu1 }
 0xa08   : > { %v1814_v42 = vpop.xlane.xlu0 %1813 }
 0xa09   : > { %v1815_v43 = vsub.f32 %v1806_v37, %v1814_v42  ;;  %v2888_v42 = vld [vmem:[%s4056_s26 + $0xc] sm:$0xf] }
 0xa0b   : > { %v1816_v44 = vmul.f32 1.442695, %v1815_v43  ;;  %v2230_v43 = vsel %vm1123_vm4, %v2888_v42, 0 }
 0xa0d   : > { %3301 = vpow2.f32 %v1816_v44 }
 0xa1a   : > { %v3302_v45 = vpop.eup %3301 }
 0xa1b   : > { %v1818_v46 = vsel %vm1061_vm3, %v3302_v45, 0.0 }
 0xa1c   : > { %1819 = vadd.xlane.f32.xlu1 %v1818_v46 }
 0xaa5   : > { %v1820_v49 = vpop.xlane.xlu1 %1819 }
 0xaa6   : > { %3303 = vrcp.f32 %v1820_v49 }
 0xab3   : > { %v3304_v50 = vpop.eup %3303 }
 0xab4   : > { %v1822_v51 = vmul.f32 %v3304_v50, %v3302_v45 }
 0xab6   : > { %v1823_v53 = vpack.c.bf16 %v1822_v51, %v1822_v51 }
 0xab8   : > { %3105 = vmatmul.mubr.msk.bf16.vlgmr.msra.gmra.mxu0 %vm1061_vm3, %v1823_v53 }
 0xab9   : > { %3115 = vmatpush3.bf16.msra.mxu0 %v3275_v52  ;;  %3118 = vmatprep.mubr.msk.bf16.mxu0 %vm3406_vm2, %v3405_v9 }
 0xaba   : > { %3116 = vmatprep.subr.bf16.mxu0 %v3405_v9 }
 0xabd   : > { %3117 = vmatpush3.bf16.msra.mxu0 %v3276_v54 }
 0xabe   : > { %3130 = vmatprep.subr.bf16.mxu0 %v3405_v9 }
 0xac0   : > { %3119 = vmatmul.mubr.msk.bf16.vlgmr.msra.gmra.mxu0 %vm833_vm1, %v3685_v21 }
 0xac1   : > { %3131 = vmatpush3.bf16.msra.mxu0 %v3277_v55  ;;  %3134 = vmatprep.mubr.msk.bf16.mxu0 %vm3406_vm2, %v3405_v9  ;;  %v2890_v55 = vld [vmem:[%s4057_s0] ss:$0 sm:$0xff] }
 0xac2   : > { %3132 = vmatprep.subr.bf16.mxu0 %v3405_v9 }
 0xac5   : > { %3133 = vmatpush3.bf16.msra.mxu0 %v3278_v56 }
 0xac6   : > { %3144 = vmatprep.subr.bf16.mxu0 %v3405_v9 }
 0xac8   : > { %3135 = vmatmul.mubr.msk.bf16.vlgmr.msra.gmra.mxu0 %vm833_vm1, %v3685_v21 }
 0xac9   : > { %3146 = vmatprep.mubr.msk.bf16.mxu0 %vm3406_vm2, %v3405_v9 }
 0xb78   : > { %v1864_v57 = vpop.f32.mrf.mxu0 }
 0xb79   : > { %v1870_v59 = vpack.c.bf16 %v1864_v57, %v1864_v57 }
 0xb7a   : > { %v3106_v60 = vpop.f32.mrf.mxu0 }
 0xb7b   : > { %3111 = vmatmul.mubr.msk.bf16.vlgmr.msra.gmra.mxu1 %vm1061_vm3, %v1870_v59 }
 0xb7c   : > { %v1867_v61 = vpop.f32.mrf.mxu0  ;;  %3123 = vmatpush3.bf16.msra.mxu1 %v3279_v58  ;;  %3126 = vmatprep.mubr.msk.bf16.mxu1 %vm3406_vm2, %v3405_v9 }
 0xb7d   : > { %3124 = vmatprep.subr.bf16.mxu1 %v3405_v9 }
 0xb7e   : > { %v3107_v63 = vpop.f32.mrf.mxu0 }
 0xb80   : > { %v1989_v2 = vpop.f32.mrf.mxu0  ;;  %3125 = vmatpush3.bf16.msra.mxu1 %v3280_v62 }
 0xb81   : > { %3138 = vmatprep.subr.bf16.mxu1 %v3405_v9  ;;  %v1990_v27 = vadd.f32 %v2872_v23, %v1989_v2 }
 0xb82   : > { %v3120_v3 = vpop.f32.mrf.mxu0 }
 0xb83   : > { %3127 = vmatmul.mubr.msk.bf16.vlgmr.msra.gmra.mxu1 %vm833_vm1, %v3685_v21  ;;  %v1562_v21 = vadd.f32 %v3783_v0, %v3801_v16  ;;  %v2115_v32 = vmul.f32 0.35355338, %v1990_v27 }
 0xb84   : > { %v1992_v4 = vpop.f32.mrf.mxu0  ;;  %3140 = vmatprep.mubr.msk.bf16.mxu1 %vm3406_vm2, %v3405_v9 }
 0xb85   : > { %v2116_v0 = vpack.c.bf16 %v2115_v32, %v2115_v32 }
 0xb86   : > { %v3121_v5 = vpop.f32.mrf.mxu0 }
 0xb87   : > { %v3282_v5 = vld [vmem:[%s3638_s8] sm:$0xff]  }
 0xb88   : > { %v2109_v7 = vpop.f32.mrf.mxu0 }
 0xb89   : > { %v2110_v8 = vadd.f32 %v2882_v6, %v2109_v7  ;;  %v3283_v6 = vld [vmem:[%s3647_s23 + $0x38] sm:$0xff]   ;;  %v3284_v7 = vld [vmem:[%s3647_s23 + $0x30] sm:$0xff]  }
 0xb8a   : > { %v3136_v10 = vpop.f32.mrf.mxu0 }
 0xb8b   : > { %v2118_v11 = vpack.c.bf16 %v2110_v8, %v2110_v8  ;;  %v3285_v8 = vld [vmem:[%s3647_s23 + $0x28] sm:$0xff]   ;;  %v3286_v10 = vld [vmem:[%s3647_s23 + $0x20] sm:$0xff]  }
 0xb8c   : > { %v2112_v12 = vpop.f32.mrf.mxu0 }
 0xb8d   : > { %v2181_v13 = vsel %vm1123_vm4, %v2118_v11, 0  ;;  %v3287_v11 = vld [vmem:[%s3647_s23 + $0x18] sm:$0xff]   ;;  %v3288_v12 = vld [vmem:[%s3647_s23 + $0x10] sm:$0xff]  }
 0xb8e   : > { %v3137_v14 = vpop.f32.mrf.mxu0  ;;  %3145 = vmatpush3.bf16.msra.mxu0 %v2181_v13 }
 0xb8f   : > { %3156 = vmatprep.subr.bf16.mxu0 %v3405_v9 }
 0xc3b   : > { %v1913_v15 = vpop.f32.mrf.mxu1 }
 0xc3c   : > { %v1919_v17 = vadd.f32 %v1913_v15, %v1562_v21 }
 0xc3d   : > { %v3112_v18 = vpop.f32.mrf.mxu1 }
 0xc3f   : > { %v1916_v19 = vpop.f32.mrf.mxu1 }
 0xc40   : > { %v2892_v19 = vld [vmem:[%s4060_s18] ss:$0 sm:$0xff] }
 0xc41   : > { %v3113_v20 = vpop.f32.mrf.mxu1 }
 0xc43   : > { %v2049_v24 = vpop.f32.mrf.mxu1 }
 0xc44   : > { %v2050_v25 = vadd.f32 %v2877_v22, %v2049_v24  ;;  %v3289_v24 = vld [vmem:[%s3647_s23 + $0x8] sm:$0xff]  }
 0xc45   : > { %v3128_v26 = vpop.f32.mrf.mxu1 }
 0xc46   : > { %v2117_v28 = vpack.c.bf16 %v2050_v25, %v2050_v25  ;;  %v3290_v25 = vld [vmem:[%s3647_s23] sm:$0xff]  }
 0xc47   : > { %v2052_v29 = vpop.f32.mrf.mxu1  ;;  %v2893_v26 = vld [vmem:[%s815_s4] ss:$0 sm:$0xff]  ;;  %s4063_s4 = sld [smem:[#allocation8_spill]] }
 0xc48   : > { %v2123_v30 = vsel %vm1061_vm3, %v2117_v28, 0 }
 0xc49   : > { %v3129_v31 = vpop.f32.mrf.mxu1  ;;  %3139 = vmatpush3.bf16.xpose.msra.mxu1 %v2123_v30 }
 0xc4a   : > { %3150 = vmatprep.subr.bf16.mxu1 %v3405_v9 }
 0xc4d   : > { %p2906_p1 = scmp.ne.s32.totalorder %s4063_s4, 1 }
 0xc50   : > { %3141 = vmatmul.mubr.msk.bf16.vlgmr.msra.gmra.mxu1 %vm1061_vm3, %v2116_v0 }
 0xc51   : > { %3152 = vmatprep.mubr.msk.bf16.mxu1 %vm3406_vm2, %v3405_v9  ;;  %3151 = vmatpush3.bf16.msra.mxu1 %v2230_v43 }
 0xc52   : > { %3164 = vmatprep.subr.bf16.mxu1 %v3405_v9 }
 0xd10   : > { %v2159_v16 = vpop.f32.mrf.mxu1 }
 0xd11   : > { %v2165_v33 = vsel %vm1061_vm3, %v2159_v16, -inf }
 0xd12   : > { %2166 = vmax.xlane.f32.xlu0 %v2165_v33  ;;  %v3142_v34 = vpop.f32.mrf.mxu1 }
 0xd14   : > { %v2162_v35 = vpop.f32.mrf.mxu1 }
 0xd16   : > { %v3143_v36 = vpop.f32.mrf.mxu1 }
 0xd9b   : > { %v2167_v37 = vpop.xlane.xlu0 %2166 }
 0xd9c   : > { %v2168_v38 = vsub.f32 %v2159_v16, %v2167_v37 }
 0xd9e   : > { %v2169_v39 = vmul.f32 1.442695, %v2168_v38 }
 0xda0   : > { %3305 = vpow2.f32 %v2169_v39 }
 0xdad   : > { %v3306_v40 = vpop.eup %3305 }
 0xdae   : > { %v2171_v41 = vsel %vm1061_vm3, %v3306_v40, 0.0 }
 0xdaf   : > { %2172 = vadd.xlane.f32.xlu1 %v2171_v41 }
 0xe38   : > { %v2173_v44 = vpop.xlane.xlu1 %2172 }
 0xe39   : > { %3307 = vrcp.f32 %v2173_v44 }
 0xe46   : > { %v3308_v45 = vpop.eup %3307 }
 0xe47   : > { %v2175_v46 = vmul.f32 %v3308_v45, %v3306_v40 }
 0xe49   : > { %v2176_v47 = vpack.c.bf16 %v2175_v46, %v2175_v46 }
 0xe4b   : > { %3147 = vmatmul.mubr.msk.bf16.vlgmr.msra.gmra.mxu0 %vm1061_vm3, %v2176_v47 }
 0xe4c   : > { %3160 = vmatprep.mubr.msk.bf16.mxu0 %vm3406_vm2, %v3405_v9 }
 0xf0b   : > { %v2217_v48 = vpop.f32.mrf.mxu0 }
 0xf0c   : > { %v2223_v49 = vpack.c.bf16 %v2217_v48, %v2217_v48 }
 0xf0d   : > { %v3148_v50 = vpop.f32.mrf.mxu0 }
 0xf0e   : > { %3153 = vmatmul.mubr.msk.bf16.vlgmr.msra.gmra.mxu1 %vm1061_vm3, %v2223_v49 }
 0xf0f   : > { %v2220_v51 = vpop.f32.mrf.mxu0  ;;  %3180 = vmatprep.mubr.msk.bf16.mxu1 %vm3406_vm2, %v3405_v9  ;;  %3165 = vmatpush3.bf16.msra.mxu1 %v3283_v6 }
 0xf10   : > { %3166 = vmatprep.subr.bf16.mxu1 %v3405_v9 }
 0xf11   : > { %v3149_v52 = vpop.f32.mrf.mxu0 }
 0xf13   : > { %3167 = vmatpush3.bf16.msra.mxu1 %v3284_v7 }
 0xf14   : > { %3168 = vmatprep.subr.bf16.mxu1 %v3405_v9 }
 0xf17   : > { %3169 = vmatpush3.bf16.msra.mxu1 %v3285_v8 }
 0xf18   : > { %3170 = vmatprep.subr.bf16.mxu1 %v3405_v9 }
 0xf1b   : > { %3171 = vmatpush3.bf16.msra.mxu1 %v3286_v10 }
 0xf1c   : > { %3172 = vmatprep.subr.bf16.mxu1 %v3405_v9 }
 0xf1f   : > { %3173 = vmatpush3.bf16.msra.mxu1 %v3287_v11 }
 0xf20   : > { %3174 = vmatprep.subr.bf16.mxu1 %v3405_v9 }
 0xf23   : > { %3175 = vmatpush3.bf16.msra.mxu1 %v3288_v12 }
 0xf24   : > { %3176 = vmatprep.subr.bf16.mxu1 %v3405_v9 }
 0xf27   : > { %3177 = vmatpush3.bf16.msra.mxu1 %v3289_v24 }
 0xf28   : > { %3178 = vmatprep.subr.bf16.mxu1 %v3405_v9 }
 0xf2b   : > { %3179 = vmatpush3.bf16.msra.mxu1 %v3290_v25 }
 0xfce   : > { %v2266_v53 = vpop.f32.mrf.mxu1 }
 0xfcf   : > { %v2272_v54 = vadd.f32 %v2266_v53, %v1919_v17  ;;  %v2891_v17 = vld [vmem:[%s4059_s5] ss:$0 sm:$0xff] }
 0xfd0   : > { %v3154_v56 = vpop.f32.mrf.mxu1 }
 0xfd1   : > { %v2273_v57 = vadd.f32 %v2272_v54, %v3658_v1  ;;  %v3281_v1 = vld [vmem:[%s3638_s8 + $0x8] sm:$0xff]  }
 0xfd2   : > { %v2269_v58 = vpop.f32.mrf.mxu1  ;;  %3157 = vmatpush3.bf16.msra.mxu0 %v3281_v1 }
 0xfd3   : > { %v3874_v59 = vadd.f32 %v2890_v55, %v2273_v57  ;;  %3158 = vmatprep.subr.bf16.mxu0 %v3405_v9  ;;  %v2897_v9 = vld [vmem:[%s823_s11] ss:$0 sm:$0xff] }
 0xfd4   : > { %v3155_v60 = vpop.f32.mrf.mxu1 }
 0xfd5   : > { %v2282_v61 = vsel %vm833_vm1, %v3874_v59, 0.0 }
 0xfd6   : > { %2283 = vadd.xlane.f32.xlu0 %v2282_v61  ;;  %3159 = vmatpush3.bf16.msra.mxu0 %v3282_v5 }
0x105f   : > { %v2284_v62 = vpop.xlane.xlu0 %2283 }
0x1060   : > { %v2285_v63 = vmul.f32 0.03125, %v2284_v62 }
0x1062   : > { %v2286_v2 = vsub.f32 %v3874_v59, %v2285_v63 }
0x1064   : > { %v2287_v3 = vmul.f32 %v2286_v2, %v2286_v2 }
0x1066   : > { %v2288_v4 = vsel %vm833_vm1, %v2287_v3, 0.0 }
0x1067   : > { %2289 = vadd.xlane.f32.xlu1 %v2288_v4 }
0x10f0   : > { %v2290_v13 = vpop.xlane.xlu1 %2289 }
0x10f1   : > { %v2291_v14 = vmul.f32 0.03125, %v2290_v13 }
0x10f3   : > { %v2292_v21 = vadd.f32 1e-05, %v2291_v14 }
0x10f5   : > { %3309 = vrsqrt.f32 %v2292_v21 }
0x1102   : > { %v3310_v15 = vpop.eup %3309 }
0x1103   : > { %v2294_v18 = vmul.f32 %v3310_v15, %v2286_v2 }
0x1105   : > { %v2302_v20 = vmul.f32 %v2891_v17, %v2294_v18 }
0x1107   : > { %v2310_v22 = vadd.f32 %v2892_v19, %v2302_v20 }
0x1109   : > { %v2311_v23 = vpack.c.bf16 %v2310_v22, %v2310_v22 }
0x110b   : > { %3161 = vmatmul.mubr.msk.bf16.vlgmr.msra.gmra.mxu0 %vm833_vm1, %v2311_v23 }
0x11cb   : > { %v2372_v27 = vpop.f32.mrf.mxu0 }
0x11cc   : > { %v2373_v28 = vadd.f32 %v2893_v26, %v2372_v27 }
0x11cd   : > { %v3162_v29 = vpop.f32.mrf.mxu0 }
0x11ce   : > { %v2378_v30 = vmax.f32 %v2373_v28, 0.0 }
0x11cf   : > { %v2375_v31 = vpop.f32.mrf.mxu0 }
0x11d0   : > { %v2379_v32 = vpack.c.bf16 %v2378_v30, %v2378_v30 }
0x11d1   : > { %v3163_v0 = vpop.f32.mrf.mxu0 }
0x11d2   : > { %3181 = vmatmul.mubr.bf16.vlgmr.msra.gmra.mxu1 %v2379_v32 }
0x1292   : > { %v2485_v16 = vpop.f32.mrf.mxu1 }
0x1293   : > { %v2486_v33 = vadd.f32 %v2897_v9, %v2485_v16 }
0x1294   : > { %v3182_v34 = vpop.f32.mrf.mxu1  ;;  %2496 = sbr.rel (%p2906_p1) target bundleno = 4777 (0x12a9), region = 96 }
0x1295   : > { %v2491_v35 = vadd.f32 %v2486_v33, %v3874_v59 }
0x1296   : > { %v2488_v36 = vpop.f32.mrf.mxu1 }
0x1297   : > { %2492 = vst.msk [vmem:[#allocation2] sm:$0xff] %vm833_vm1, %v2491_v35 }
0x1298   : > { %v3183_v37 = vpop.f32.mrf.mxu1 }
0x1299   : > { %v2497_v38 = vsel %vm833_vm1, %v2491_v35, 0.0  ;;  %vm2506_vm5 = vcmask 253952  }
0x129a   : > { %v2498_v39 = vrot.slane %v2497_v38, 4 }
0x129c   : > { %v2499_v40 = vadd.f32 %v2498_v39, %v2497_v38 }
0x129e   : > { %v2500_v41 = vrot.slane %v2499_v40, 2 }
0x12a0   : > { %v2501_v42 = vadd.f32 %v2500_v41, %v2499_v40 }
0x12a2   : > { %v2502_v43 = vrot.slane %v2501_v42, 1 }
0x12a4   : > { %v2503_v44 = vadd.f32 %v2502_v43, %v2501_v42 }
0x12a6   : > { %v2505_v45 = vmul.f32 0.125, %v2503_v44 }
0x12a8   : > { %2507 = vst.msk [vmem:[%s3655_s16] sm:$0x1] %vm2506_vm5, %v2505_v45 }
0x12a9 PF: > { %s4064_s11 = sld [smem:[#allocation9_spill]]  ;;  %s2521_s26 = sshll.u32 %s3655_s16, 4  ;;  %s2522_s26 = int_to_ptr.vmem [resolvable:$true] %s2521_s26 }
0x12aa   : > { %s4066_s17 = sld [smem:[#allocation34_spill]]  ;;  %s4067_s28 = sand.u32 1, %s3379_s25  }
0x12ab   : > { %s2509_s29 = scalar_lea.sflag [#allocation4], %s4067_s28  ;;  %s3311_s0 = scalar_lea.vmem %s2522_s26, 16 }
0x12ac   : > { %p3312_p2 = scmp.ne.s32.totalorder %s2522_s26, %s3311_s0  ;;  %s3407_s8 = smov [#allocation3]  }
0x12ad   : > { %s3315_s19 = sshll.u32 %s3407_s8, 4  ;;  %s3316_s19 = int_to_ptr.vmem [resolvable:$false] %s3315_s19 }
0x12ae   : > { %p3313_p4 = pnand %p3312_p2, %p3547_p3  ;;  %s3317_s22 = scalar_lea.vmem %s3316_s19, 32 }
0x12af   : > { %s2907_s23 = sshll.u32 %s4064_s11, 4  ;;  %p3318_p6 = scmp.lt.s32.totalorder %s2522_s26, %s3316_s19 }
0x12b0   : > { %s2519_s20 = scalar_lea.hbm %s4066_s17, %s2907_s23  ;;  %p3314_p5 = pneg %p3313_p4 }
0x12b1   : > { %p3319_p7 = scmp.lt.s32.totalorder %s3317_s22, %s3311_s0 }
0x12b3   : > { %p3320_p8 = por %p3319_p7, %p3318_p6 }
0x12b5   : > { %p3321_p10 = pnand %p3320_p8, %p3314_p5 }
0x12b7   : > { %3324 = shalt.err (!%p3321_p10)
}
0x12b8   : > { %s3325_s5 = scalar_lea.hbm %s2519_s20, 16  ;;  %s3329_s6 = scalar_lea.hbm %s4066_s17, 32 }
0x12b9   : > { %p3326_p11 = scmp.ne.s32.totalorder %s2519_s20, %s3325_s5  ;;  %p3330_p0 = scmp.lt.s32.totalorder %s2519_s20, %s4066_s17 }
0x12ba   : > { %p3331_p1 = scmp.lt.s32.totalorder %s3329_s6, %s3325_s5 }
0x12bb   : > { %p3327_p12 = pnand %p3326_p11, %p3547_p3 }
0x12bc   : > { %p3332_p2 = por %p3331_p1, %p3330_p0 }
0x12bd   : > { %p3328_p13 = pneg %p3327_p12 }
0x12bf   : > { %p3333_p4 = pnand %p3332_p2, %p3328_p13 }
0x12c1   : > { %3336 = shalt.err (!%p3333_p4)
}
0x12c2   : > { %3184 = dma.vmem_to_hbm [thread:$0]  (%p3547_p3), %s2522_s26, 16, %s2519_s20, %s2509_s29  }
0x12c3 PF: > { %s4068_s3 = sld [smem:[#allocation12_spill]] }
0x12c4   : > { %s4069_s9 = sld [smem:[#allocation6_spill]] }
0x12c9   : > { %p3190_p5 = scmp.ge.s32.totalorder %s4068_s3, 2 }
0x12ca   : > { %s2533_s30 = sand.u32 1, %s4069_s9  }
0x12cb   : > { %p3187_p6 = pnand %p3190_p5, %p3557_p9  ;;  %s2534_s1 = scalar_lea.sflag [#allocation4], %s2533_s30 }
0x12cd   : > { %p3188_p7 = pneg %p3187_p6 }
0x12cf   : > { %3370 = dma.done.wait (%p3188_p7), %s2534_s1, 16  }
0x12d0   : > { %3372 = vsyncadd (%p3188_p7), %s2534_s1, 4294967280  ;;  %s30_s30 = sadd.s32 1, %s4068_s3   ;;  %s4071_s4 = sld [smem:[#allocation7_spill]] }
0x12d1   : > { %p27_p8 = scmp.ge.s32.totalorder %s30_s30, 6   ;;  %s4072_s26 = sld [smem:[#allocation17_spill]] }
0x12d2   : > { %s4073_s27 = sld [smem:[#allocation10_spill]]  ;;  %s4077_s24 = smov %s3379_s25 }
0x12d3   : > { %s4074_s28 = sld [smem:[#allocation11_spill]]  ;;  %29 = sbr.rel (!%p27_p8) target bundleno = 20 (0x14), region = 200 }
0x12d4   : > { %s4075_s29 = sld [smem:[#allocation13_spill]] }
0x12d5   : > { %s4076_s0 = sld [smem:[#allocation15_spill]] }
0x12d6   : > { %s4078_s25 = smov %s4071_s4 }
0x12d8   :  { %2538 = vsyncpa [#allocation4], 1 }
0x12d9   :  { %2540 = vsyncpa [#allocation4 + $0x1], 1 }

</bundles_post_ra>
